<compile_context>
chip_gen: v7x
topology: tpu7x:2x2x1
jax: 0.10.0
libtpu: 0.0.40
codegen_flags: <defaults>
</compile_context>

<pallas_src>
import functools
import math

import numpy as np

import jax
import jax.numpy as jnp
from jax.experimental import pallas as pl
from jax.experimental.pallas import tpu as pltpu


def _upsample_conv_kernel(row_src_ref, x_ref, ew_ref, w_ref, o_ref,
                          xw_ref, xflat_ref, *, KH, KW, TH, WL):
    """One (batch, output-row-tile) grid step.

    row_src_ref: (Hp,) int32 SMEM    padded-row -> original-input-row gather table
                                     (H-axis nearest upsample + reflection folded in)
    x_ref      : (1, H*Cin, W)       original image, rows ordered (h, cin), W on lanes
    ew_ref     : (W, WL)             0/1 matrix: W-axis nearest upsample + reflection pad
    w_ref      : (Cout, KH*KW*Cin)   conv weights, columns ordered (kh, kw, cin)
    o_ref      : (1, Cout, TH*WL)    lane-dense output slab (garbage columns sliced
                                     off by the wrapper)
    xw_ref     : (H*Cin, WL)  VMEM   W-expanded image (built once per batch)
    xflat_ref  : (Cin, TH_in*WL+KW-1) VMEM  flat, lane-pitched padded-image tile
    """
    r = pl.program_id(1)
    Cin, FL = xflat_ref.shape
    TH_in = TH + KH - 1
    M = TH * WL

    # ---- once per batch: W-axis nearest-upsample + reflection pad as one MXU matmul
    @pl.when(r == 0)
    def _build_w_expanded():
        xw_ref[...] = jnp.dot(x_ref[0], ew_ref[...],
                              preferred_element_type=jnp.float32)

    # ---- per tile: H-axis gather (upsample + reflection) into the flat scratch.
    #      Lane pitch == WL, so every conv tap below is a pure static lane shift.
    tail = FL - TH_in * WL
    if tail:  # lanes only ever read by discarded (garbage) output columns
        xflat_ref[:, TH_in * WL:] = jnp.zeros((Cin, tail), jnp.float32)
    for h in range(TH_in):                       # static unrolled loop (TH + KH - 1)
        src = row_src_ref[r * TH + h]            # original input row for padded row
        xflat_ref[:, h * WL:(h + 1) * WL] = xw_ref[pl.ds(src * Cin, Cin), :]

    # ---- im2col with spatial on lanes: taps are lane shifts, concat is a sublane stack
    taps = [xflat_ref[:, kh * WL + kw: kh * WL + kw + M]
            for kh in range(KH) for kw in range(KW)]
    patches = jnp.concatenate(taps, axis=0)      # (KH*KW*Cin, TH*WL)

    # ---- weight-stationary matmul: result is already (Cout, M); lane-dense store
    acc = jnp.dot(w_ref[...], patches, preferred_element_type=jnp.float32)
    o_ref[0] = acc.astype(o_ref.dtype)


def _choose_tile(*, Ho, Wp, H, W, Cin, Cout, KH, KW):
    """Pick (TH, WL, vmem_limit): largest output-row tile whose working set fits VMEM."""
    def rup(a, m):
        return -(-a // m) * m

    try:
        cap = int(pltpu.get_tpu_info().vmem_capacity_bytes)
    except Exception:
        cap = 64 * 1024 * 1024                    # v7x floor
    budget = int(cap * 0.55)                      # leave headroom for compiler temps

    def plan(TH):
        # Output-block minor dim must be a multiple of 128 unless the tile covers
        # all rows (full-extent block), so pad the lane pitch WL when tiling rows.
        WL = Wp if TH == Ho else rup(Wp, 128 // math.gcd(TH, 128))
        TH_in = TH + KH - 1
        M = TH * WL
        FL = TH_in * WL + (KW - 1)
        Kt = KH * KW * Cin
        f = 4  # f32
        need = (
            2 * rup(H * Cin, 8) * rup(W, 128) * f      # input block (double buffered)
            + 2 * rup(W, 8) * rup(WL, 128) * f         # E_w block
            + 2 * rup(Cout, 8) * rup(Kt, 128) * f      # weight block
            + 2 * rup(Cout, 8) * rup(M, 128) * f       # output block
            + rup(H * Cin, 8) * rup(WL, 128) * f       # W-expanded image scratch
            + rup(Cin, 8) * rup(FL, 128) * f           # flat padded-image scratch
            + rup(Kt, 8) * rup(M, 128) * f             # im2col patches value
            + 2 * rup(Cout, 8) * rup(M, 128) * f       # matmul accumulator / temps
        )
        return WL, need

    cands = [d for d in range(min(Ho, 256), 0, -1) if Ho % d == 0]
    TH = cands[-1]                                 # fallback: smallest row tile
    WL, need = plan(TH)
    for th in cands:                               # largest tile first
        wl, nd = plan(th)
        if nd <= budget:
            TH, WL, need = th, wl, nd
            break
    # TODO(synk): add column tiling for problems where even the smallest row tile
    # overflows the VMEM budget.
    vmem_limit = int(min(max(need * 13 // 10, 32 * 1024 * 1024), cap * 9 // 10))
    return TH, WL, vmem_limit


def upsample_conv_layer(x, weight, bias, *, kernel_size, stride, upsample=None):
    """Forward of UpsampleConvLayer: nearest-upsample -> ReflectionPad2d -> Conv2d.

    x:      (N, Cin, H, W)       NCHW
    weight: (Cout, Cin, KH, KW)  torch Conv2d layout
    bias:   (Cout,)
    returns (N, Cout, Ho, Wo)    NCHW
    """
    N, Cin, H, W = x.shape
    Cout, Cin_w, KH, KW = weight.shape
    assert Cin_w == Cin and KH == kernel_size and KW == kernel_size
    if stride != 1:
        # TODO(synk): strided conv needs a strided lane gather of the flat scratch;
        # upsample-conv layers use stride=1 in practice.
        raise NotImplementedError("upsample_conv_layer kernel supports stride == 1 only")

    u = int(upsample) if upsample else 1
    p = kernel_size // 2
    Hu, Wu = H * u, W * u
    if p > 0:
        assert p < Hu and p < Wu, "reflection pad must be smaller than the upsampled size"
    Hp, Wp = Hu + 2 * p, Wu + 2 * p
    Ho, Wo = Hp - KH + 1, Wp - KW + 1

    TH, WL, vmem_limit = _choose_tile(Ho=Ho, Wp=Wp, H=H, W=W, Cin=Cin, Cout=Cout,
                                      KH=KH, KW=KW)
    RT = Ho // TH
    TH_in = TH + KH - 1
    M = TH * WL
    FL = TH_in * WL + (KW - 1)
    Ktot = KH * KW * Cin

    # Static gather tables: nearest upsample + reflection pad, per axis.
    def _src(i, n_up):
        iu = i - p
        if iu < 0:
            iu = -iu
        elif iu >= n_up:
            iu = 2 * n_up - 2 - iu
        return iu // u

    row_src = jnp.asarray(np.array([_src(h, Hu) for h in range(Hp)], dtype=np.int32))
    ew_np = np.zeros((W, WL), np.float32)
    for j in range(Wp):
        ew_np[_src(j, Wu), j] = 1.0
    ew = jnp.asarray(ew_np)

    # torch (Cout, Cin, KH, KW) -> (Cout, KH*KW*Cin), columns ordered (kh, kw, cin).
    w_mat = jnp.transpose(weight, (0, 2, 3, 1)).reshape(Cout, Ktot).astype(jnp.float32)

    # (N, Cin, H, W) -> (N, H*Cin, W): rows ordered (h, cin), W on lanes.  This is the
    # only image-sized XLA glue (tiny: pre-upsample tensor).
    x_t = jnp.transpose(x, (0, 2, 1, 3)).reshape(N, H * Cin, W).astype(jnp.float32)

    kernel = functools.partial(_upsample_conv_kernel, KH=KH, KW=KW, TH=TH, WL=WL)

    out_flat = pl.pallas_call(
        kernel,
        out_shape=jax.ShapeDtypeStruct((N, Cout, Ho * WL), x.dtype),
        grid_spec=pltpu.PrefetchScalarGridSpec(
            num_scalar_prefetch=1,
            grid=(N, RT),
            in_specs=[
                # Original (pre-upsample) image; constant in r -> resident per batch.
                pl.BlockSpec((1, H * Cin, W), lambda n, r, rs: (n, 0, 0)),
                pl.BlockSpec((W, WL), lambda n, r, rs: (0, 0)),
                pl.BlockSpec((Cout, Ktot), lambda n, r, rs: (0, 0)),
            ],
            out_specs=pl.BlockSpec((1, Cout, M), lambda n, r, rs: (n, 0, r)),
            scratch_shapes=[
                pltpu.VMEM((H * Cin, WL), jnp.float32),  # W-expanded image (per batch)
                pltpu.VMEM((Cin, FL), jnp.float32),      # flat padded row tile
            ],
        ),
        compiler_params=pltpu.CompilerParams(
            # TODO(synk): for N == 1 on v7x, parallelize the row-tile axis instead
            # (needs the per-batch W-expansion hoisted out of the r == 0 step).
            dimension_semantics=("parallel", "arbitrary"),
            vmem_limit_bytes=vmem_limit),
    )(row_src, x_t, ew, w_mat)

    # Drop the KW-1 (plus any pitch-padding) garbage columns per output row and add
    # the bias in exact f32; XLA fuses the add into this single small slice pass.
    out = out_flat.reshape(N, Cout, Ho, WL)[..., :Wo]
    return out + bias[None, :, None, None].astype(out.dtype)


def _reference(x, weight, bias, *, kernel_size, stride, upsample=None):
    """Pure-JAX reference (mirrors the PyTorch forward)."""
    if upsample:
        x = jnp.repeat(jnp.repeat(x, upsample, axis=2), upsample, axis=3)
    pad = kernel_size // 2
    if pad > 0:
        x = jnp.pad(x, ((0, 0), (0, 0), (pad, pad), (pad, pad)), mode="reflect")
    out = jax.lax.conv_general_dilated(
        x, weight, window_strides=(stride, stride), padding="VALID",
        dimension_numbers=("NCHW", "OIHW", "NCHW"))
    return out + bias[None, :, None, None]


if __name__ == "__main__":
    # Module config: in_channels=4, out_channels=8, kernel_size=3, stride=1, upsample=2
    N, Cin, H, W = 2, 4, 16, 16
    Cout, K, STRIDE, UPSAMPLE = 8, 3, 1, 2

    key = jax.random.PRNGKey(0)
    kx, kw, kb = jax.random.split(key, 3)

    x = jax.random.normal(kx, (N, Cin, H, W), dtype=jnp.float32)

    # Deterministic Conv2d-style init (uniform in +/- 1/sqrt(fan_in)).
    fan_in = Cin * K * K
    bound = 1.0 / (fan_in ** 0.5)
    weight = jax.random.uniform(kw, (Cout, Cin, K, K), jnp.float32, -bound, bound)
    bias = jax.random.uniform(kb, (Cout,), jnp.float32, -bound, bound)

    out = upsample_conv_layer(x, weight, bias, kernel_size=K, stride=STRIDE,
                              upsample=UPSAMPLE)
    out = jax.block_until_ready(out)

    ref = _reference(x, weight, bias, kernel_size=K, stride=STRIDE,
                     upsample=UPSAMPLE)
    assert out.shape == ref.shape == (N, Cout, H * UPSAMPLE, W * UPSAMPLE)
    assert jnp.allclose(out, ref, atol=1e-4, rtol=1e-4)

    print("KERNEL_OK")
</pallas_src>

<mosaic_0001>
module attributes {stable_mosaic.version = 11 : i64} {
  func.func @_upsample_conv_kernel(%arg0: i32, %arg1: i32, %arg2: memref<34xi32, #tpu.memory_space<smem>>, %arg3: memref<1x64x16xf32, #tpu.memory_space<vmem>>, %arg4: memref<16x34xf32, #tpu.memory_space<vmem>>, %arg5: memref<8x36xf32, #tpu.memory_space<vmem>>, %arg6: memref<1x8x1088xf32, #tpu.memory_space<vmem>>, %arg7: memref<64x34xf32, #tpu.memory_space<vmem>>, %arg8: memref<4x1158xf32, #tpu.memory_space<vmem>>) attributes {dimension_semantics = [#tpu.dimension_semantics<parallel>, #tpu.dimension_semantics<arbitrary>], iteration_bounds = array<i64: 2, 1>, scalar_prefetch = 1 : i64, scratch_operands = 2 : i64, tpu.core_type = #tpu.core_type<tc>, window_params = [{transform_indices = @transform_0, window_bounds = array<i64: 1, 64, 16>}, {pipeline_mode = #tpu.pipeline_mode<synchronous>, transform_indices = @transform_1, window_bounds = array<i64: 16, 34>}, {pipeline_mode = #tpu.pipeline_mode<synchronous>, transform_indices = @transform_2, window_bounds = array<i64: 8, 36>}, {transform_indices = @transform_3, window_bounds = array<i64: 1, 8, 1088>}]} {
    %c0_i32 = arith.constant 0 : i32
    %0 = arith.cmpi eq, %arg1, %c0_i32 : i32
    %1 = arith.extui %0 : i1 to i32
    %c0_i32_0 = arith.constant 0 : i32
    %2 = arith.cmpi ne, %1, %c0_i32_0 : i32
    scf.if %2 {
      %c0_157 = arith.constant 0 : index
      %c0_158 = arith.constant 0 : index
      %c0_159 = arith.constant 0 : index
      %292 = vector.load %arg3[%c0_157, %c0_158, %c0_159] : memref<1x64x16xf32, #tpu.memory_space<vmem>>, vector<1x64x16xf32>
      %293 = vector.shape_cast %292 : vector<1x64x16xf32> to vector<64x16xf32>
      %c0_160 = arith.constant 0 : index
      %c0_161 = arith.constant 0 : index
      %294 = vector.load %arg4[%c0_160, %c0_161] : memref<16x34xf32, #tpu.memory_space<vmem>>, vector<16x34xf32>
      %cst_162 = arith.constant dense<0.000000e+00> : vector<64x34xf32>
      %295 = tpu.matmul %293, %294, %cst_162 {dimension_numbers = #tpu.dot_dimension_numbers<[1], [0], [0], [1], [0, 0, 1, 1], [], []>} : vector<64x16xf32>, vector<16x34xf32>, vector<64x34xf32> -> vector<64x34xf32>
      %c0_163 = arith.constant 0 : index
      %c0_164 = arith.constant 0 : index
      %296 = vector.load %arg7[%c0_163, %c0_164] : memref<64x34xf32, #tpu.memory_space<vmem>>, vector<64x34xf32>
      tpu.vector_store %arg7[%c0_163, %c0_164], %295 {strides = array<i32>} : memref<64x34xf32, #tpu.memory_space<vmem>>, vector<64x34xf32>,
    } else {
    }
    %cst = arith.constant 0.000000e+00 : f32
    %3 = vector.broadcast %cst : f32 to vector<4x2xf32>
    %c0 = arith.constant 0 : index
    %c1156 = arith.constant 1156 : index
    %4 = vector.load %arg8[%c0, %c1156] : memref<4x1158xf32, #tpu.memory_space<vmem>>, vector<4x2xf32>
    tpu.vector_store %arg8[%c0, %c1156], %3 {strides = array<i32>} : memref<4x1158xf32, #tpu.memory_space<vmem>>, vector<4x2xf32>,
    %c32_i32 = arith.constant 32 : i32
    %5 = arith.muli %arg1, %c32_i32 : i32
    %c0_i32_1 = arith.constant 0 : i32
    %6 = arith.addi %5, %c0_i32_1 : i32
    %7 = arith.index_cast %6 : i32 to index
    %8 = memref.load %arg2[%7] : memref<34xi32, #tpu.memory_space<smem>>
    %c4_i32 = arith.constant 4 : i32
    %9 = arith.muli %8, %c4_i32 : i32
    %10 = arith.index_cast %9 : i32 to index
    %c0_2 = arith.constant 0 : index
    %11 = vector.load %arg7[%10, %c0_2] : memref<64x34xf32, #tpu.memory_space<vmem>>, vector<4x34xf32>
    %c0_3 = arith.constant 0 : index
    %c0_4 = arith.constant 0 : index
    %12 = vector.load %arg8[%c0_3, %c0_4] : memref<4x1158xf32, #tpu.memory_space<vmem>>, vector<4x34xf32>
    tpu.vector_store %arg8[%c0_3, %c0_4], %11 {strides = array<i32>} : memref<4x1158xf32, #tpu.memory_space<vmem>>, vector<4x34xf32>,
    %c32_i32_5 = arith.constant 32 : i32
    %13 = arith.muli %arg1, %c32_i32_5 : i32
    %c1_i32 = arith.constant 1 : i32
    %14 = arith.addi %13, %c1_i32 : i32
    %15 = arith.index_cast %14 : i32 to index
    %16 = memref.load %arg2[%15] : memref<34xi32, #tpu.memory_space<smem>>
    %c4_i32_6 = arith.constant 4 : i32
    %17 = arith.muli %16, %c4_i32_6 : i32
    %18 = arith.index_cast %17 : i32 to index
    %c0_7 = arith.constant 0 : index
    %19 = vector.load %arg7[%18, %c0_7] : memref<64x34xf32, #tpu.memory_space<vmem>>, vector<4x34xf32>
    %c0_8 = arith.constant 0 : index
    %c34 = arith.constant 34 : index
    %20 = vector.load %arg8[%c0_8, %c34] : memref<4x1158xf32, #tpu.memory_space<vmem>>, vector<4x34xf32>
    tpu.vector_store %arg8[%c0_8, %c34], %19 {strides = array<i32>} : memref<4x1158xf32, #tpu.memory_space<vmem>>, vector<4x34xf32>,
    %c32_i32_9 = arith.constant 32 : i32
    %21 = arith.muli %arg1, %c32_i32_9 : i32
    %c2_i32 = arith.constant 2 : i32
    %22 = arith.addi %21, %c2_i32 : i32
    %23 = arith.index_cast %22 : i32 to index
    %24 = memref.load %arg2[%23] : memref<34xi32, #tpu.memory_space<smem>>
    %c4_i32_10 = arith.constant 4 : i32
    %25 = arith.muli %24, %c4_i32_10 : i32
    %26 = arith.index_cast %25 : i32 to index
    %c0_11 = arith.constant 0 : index
    %27 = vector.load %arg7[%26, %c0_11] : memref<64x34xf32, #tpu.memory_space<vmem>>, vector<4x34xf32>
    %c0_12 = arith.constant 0 : index
    %c68 = arith.constant 68 : index
    %28 = vector.load %arg8[%c0_12, %c68] : memref<4x1158xf32, #tpu.memory_space<vmem>>, vector<4x34xf32>
    tpu.vector_store %arg8[%c0_12, %c68], %27 {strides = array<i32>} : memref<4x1158xf32, #tpu.memory_space<vmem>>, vector<4x34xf32>,
    %c32_i32_13 = arith.constant 32 : i32
    %29 = arith.muli %arg1, %c32_i32_13 : i32
    %c3_i32 = arith.constant 3 : i32
    %30 = arith.addi %29, %c3_i32 : i32
    %31 = arith.index_cast %30 : i32 to index
    %32 = memref.load %arg2[%31] : memref<34xi32, #tpu.memory_space<smem>>
    %c4_i32_14 = arith.constant 4 : i32
    %33 = arith.muli %32, %c4_i32_14 : i32
    %34 = arith.index_cast %33 : i32 to index
    %c0_15 = arith.constant 0 : index
    %35 = vector.load %arg7[%34, %c0_15] : memref<64x34xf32, #tpu.memory_space<vmem>>, vector<4x34xf32>
    %c0_16 = arith.constant 0 : index
    %c102 = arith.constant 102 : index
    %36 = vector.load %arg8[%c0_16, %c102] : memref<4x1158xf32, #tpu.memory_space<vmem>>, vector<4x34xf32>
    tpu.vector_store %arg8[%c0_16, %c102], %35 {strides = array<i32>} : memref<4x1158xf32, #tpu.memory_space<vmem>>, vector<4x34xf32>,
    %c32_i32_17 = arith.constant 32 : i32
    %37 = arith.muli %arg1, %c32_i32_17 : i32
    %c4_i32_18 = arith.constant 4 : i32
    %38 = arith.addi %37, %c4_i32_18 : i32
    %39 = arith.index_cast %38 : i32 to index
    %40 = memref.load %arg2[%39] : memref<34xi32, #tpu.memory_space<smem>>
    %c4_i32_19 = arith.constant 4 : i32
    %41 = arith.muli %40, %c4_i32_19 : i32
    %42 = arith.index_cast %41 : i32 to index
    %c0_20 = arith.constant 0 : index
    %43 = vector.load %arg7[%42, %c0_20] : memref<64x34xf32, #tpu.memory_space<vmem>>, vector<4x34xf32>
    %c0_21 = arith.constant 0 : index
    %c136 = arith.constant 136 : index
    %44 = vector.load %arg8[%c0_21, %c136] : memref<4x1158xf32, #tpu.memory_space<vmem>>, vector<4x34xf32>
    tpu.vector_store %arg8[%c0_21, %c136], %43 {strides = array<i32>} : memref<4x1158xf32, #tpu.memory_space<vmem>>, vector<4x34xf32>,
    %c32_i32_22 = arith.constant 32 : i32
    %45 = arith.muli %arg1, %c32_i32_22 : i32
    %c5_i32 = arith.constant 5 : i32
    %46 = arith.addi %45, %c5_i32 : i32
    %47 = arith.index_cast %46 : i32 to index
    %48 = memref.load %arg2[%47] : memref<34xi32, #tpu.memory_space<smem>>
    %c4_i32_23 = arith.constant 4 : i32
    %49 = arith.muli %48, %c4_i32_23 : i32
    %50 = arith.index_cast %49 : i32 to index
    %c0_24 = arith.constant 0 : index
    %51 = vector.load %arg7[%50, %c0_24] : memref<64x34xf32, #tpu.memory_space<vmem>>, vector<4x34xf32>
    %c0_25 = arith.constant 0 : index
    %c170 = arith.constant 170 : index
    %52 = vector.load %arg8[%c0_25, %c170] : memref<4x1158xf32, #tpu.memory_space<vmem>>, vector<4x34xf32>
    tpu.vector_store %arg8[%c0_25, %c170], %51 {strides = array<i32>} : memref<4x1158xf32, #tpu.memory_space<vmem>>, vector<4x34xf32>,
    %c32_i32_26 = arith.constant 32 : i32
    %53 = arith.muli %arg1, %c32_i32_26 : i32
    %c6_i32 = arith.constant 6 : i32
    %54 = arith.addi %53, %c6_i32 : i32
    %55 = arith.index_cast %54 : i32 to index
    %56 = memref.load %arg2[%55] : memref<34xi32, #tpu.memory_space<smem>>
    %c4_i32_27 = arith.constant 4 : i32
    %57 = arith.muli %56, %c4_i32_27 : i32
    %58 = arith.index_cast %57 : i32 to index
    %c0_28 = arith.constant 0 : index
    %59 = vector.load %arg7[%58, %c0_28] : memref<64x34xf32, #tpu.memory_space<vmem>>, vector<4x34xf32>
    %c0_29 = arith.constant 0 : index
    %c204 = arith.constant 204 : index
    %60 = vector.load %arg8[%c0_29, %c204] : memref<4x1158xf32, #tpu.memory_space<vmem>>, vector<4x34xf32>
    tpu.vector_store %arg8[%c0_29, %c204], %59 {strides = array<i32>} : memref<4x1158xf32, #tpu.memory_space<vmem>>, vector<4x34xf32>,
    %c32_i32_30 = arith.constant 32 : i32
    %61 = arith.muli %arg1, %c32_i32_30 : i32
    %c7_i32 = arith.constant 7 : i32
    %62 = arith.addi %61, %c7_i32 : i32
    %63 = arith.index_cast %62 : i32 to index
    %64 = memref.load %arg2[%63] : memref<34xi32, #tpu.memory_space<smem>>
    %c4_i32_31 = arith.constant 4 : i32
    %65 = arith.muli %64, %c4_i32_31 : i32
    %66 = arith.index_cast %65 : i32 to index
    %c0_32 = arith.constant 0 : index
    %67 = vector.load %arg7[%66, %c0_32] : memref<64x34xf32, #tpu.memory_space<vmem>>, vector<4x34xf32>
    %c0_33 = arith.constant 0 : index
    %c238 = arith.constant 238 : index
    %68 = vector.load %arg8[%c0_33, %c238] : memref<4x1158xf32, #tpu.memory_space<vmem>>, vector<4x34xf32>
    tpu.vector_store %arg8[%c0_33, %c238], %67 {strides = array<i32>} : memref<4x1158xf32, #tpu.memory_space<vmem>>, vector<4x34xf32>,
    %c32_i32_34 = arith.constant 32 : i32
    %69 = arith.muli %arg1, %c32_i32_34 : i32
    %c8_i32 = arith.constant 8 : i32
    %70 = arith.addi %69, %c8_i32 : i32
    %71 = arith.index_cast %70 : i32 to index
    %72 = memref.load %arg2[%71] : memref<34xi32, #tpu.memory_space<smem>>
    %c4_i32_35 = arith.constant 4 : i32
    %73 = arith.muli %72, %c4_i32_35 : i32
    %74 = arith.index_cast %73 : i32 to index
    %c0_36 = arith.constant 0 : index
    %75 = vector.load %arg7[%74, %c0_36] : memref<64x34xf32, #tpu.memory_space<vmem>>, vector<4x34xf32>
    %c0_37 = arith.constant 0 : index
    %c272 = arith.constant 272 : index
    %76 = vector.load %arg8[%c0_37, %c272] : memref<4x1158xf32, #tpu.memory_space<vmem>>, vector<4x34xf32>
    tpu.vector_store %arg8[%c0_37, %c272], %75 {strides = array<i32>} : memref<4x1158xf32, #tpu.memory_space<vmem>>, vector<4x34xf32>,
    %c32_i32_38 = arith.constant 32 : i32
    %77 = arith.muli %arg1, %c32_i32_38 : i32
    %c9_i32 = arith.constant 9 : i32
    %78 = arith.addi %77, %c9_i32 : i32
    %79 = arith.index_cast %78 : i32 to index
    %80 = memref.load %arg2[%79] : memref<34xi32, #tpu.memory_space<smem>>
    %c4_i32_39 = arith.constant 4 : i32
    %81 = arith.muli %80, %c4_i32_39 : i32
    %82 = arith.index_cast %81 : i32 to index
    %c0_40 = arith.constant 0 : index
    %83 = vector.load %arg7[%82, %c0_40] : memref<64x34xf32, #tpu.memory_space<vmem>>, vector<4x34xf32>
    %c0_41 = arith.constant 0 : index
    %c306 = arith.constant 306 : index
    %84 = vector.load %arg8[%c0_41, %c306] : memref<4x1158xf32, #tpu.memory_space<vmem>>, vector<4x34xf32>
    tpu.vector_store %arg8[%c0_41, %c306], %83 {strides = array<i32>} : memref<4x1158xf32, #tpu.memory_space<vmem>>, vector<4x34xf32>,
    %c32_i32_42 = arith.constant 32 : i32
    %85 = arith.muli %arg1, %c32_i32_42 : i32
    %c10_i32 = arith.constant 10 : i32
    %86 = arith.addi %85, %c10_i32 : i32
    %87 = arith.index_cast %86 : i32 to index
    %88 = memref.load %arg2[%87] : memref<34xi32, #tpu.memory_space<smem>>
    %c4_i32_43 = arith.constant 4 : i32
    %89 = arith.muli %88, %c4_i32_43 : i32
    %90 = arith.index_cast %89 : i32 to index
    %c0_44 = arith.constant 0 : index
    %91 = vector.load %arg7[%90, %c0_44] : memref<64x34xf32, #tpu.memory_space<vmem>>, vector<4x34xf32>
    %c0_45 = arith.constant 0 : index
    %c340 = arith.constant 340 : index
    %92 = vector.load %arg8[%c0_45, %c340] : memref<4x1158xf32, #tpu.memory_space<vmem>>, vector<4x34xf32>
    tpu.vector_store %arg8[%c0_45, %c340], %91 {strides = array<i32>} : memref<4x1158xf32, #tpu.memory_space<vmem>>, vector<4x34xf32>,
    %c32_i32_46 = arith.constant 32 : i32
    %93 = arith.muli %arg1, %c32_i32_46 : i32
    %c11_i32 = arith.constant 11 : i32
    %94 = arith.addi %93, %c11_i32 : i32
    %95 = arith.index_cast %94 : i32 to index
    %96 = memref.load %arg2[%95] : memref<34xi32, #tpu.memory_space<smem>>
    %c4_i32_47 = arith.constant 4 : i32
    %97 = arith.muli %96, %c4_i32_47 : i32
    %98 = arith.index_cast %97 : i32 to index
    %c0_48 = arith.constant 0 : index
    %99 = vector.load %arg7[%98, %c0_48] : memref<64x34xf32, #tpu.memory_space<vmem>>, vector<4x34xf32>
    %c0_49 = arith.constant 0 : index
    %c374 = arith.constant 374 : index
    %100 = vector.load %arg8[%c0_49, %c374] : memref<4x1158xf32, #tpu.memory_space<vmem>>, vector<4x34xf32>
    tpu.vector_store %arg8[%c0_49, %c374], %99 {strides = array<i32>} : memref<4x1158xf32, #tpu.memory_space<vmem>>, vector<4x34xf32>,
    %c32_i32_50 = arith.constant 32 : i32
    %101 = arith.muli %arg1, %c32_i32_50 : i32
    %c12_i32 = arith.constant 12 : i32
    %102 = arith.addi %101, %c12_i32 : i32
    %103 = arith.index_cast %102 : i32 to index
    %104 = memref.load %arg2[%103] : memref<34xi32, #tpu.memory_space<smem>>
    %c4_i32_51 = arith.constant 4 : i32
    %105 = arith.muli %104, %c4_i32_51 : i32
    %106 = arith.index_cast %105 : i32 to index
    %c0_52 = arith.constant 0 : index
    %107 = vector.load %arg7[%106, %c0_52] : memref<64x34xf32, #tpu.memory_space<vmem>>, vector<4x34xf32>
    %c0_53 = arith.constant 0 : index
    %c408 = arith.constant 408 : index
    %108 = vector.load %arg8[%c0_53, %c408] : memref<4x1158xf32, #tpu.memory_space<vmem>>, vector<4x34xf32>
    tpu.vector_store %arg8[%c0_53, %c408], %107 {strides = array<i32>} : memref<4x1158xf32, #tpu.memory_space<vmem>>, vector<4x34xf32>,
    %c32_i32_54 = arith.constant 32 : i32
    %109 = arith.muli %arg1, %c32_i32_54 : i32
    %c13_i32 = arith.constant 13 : i32
    %110 = arith.addi %109, %c13_i32 : i32
    %111 = arith.index_cast %110 : i32 to index
    %112 = memref.load %arg2[%111] : memref<34xi32, #tpu.memory_space<smem>>
    %c4_i32_55 = arith.constant 4 : i32
    %113 = arith.muli %112, %c4_i32_55 : i32
    %114 = arith.index_cast %113 : i32 to index
    %c0_56 = arith.constant 0 : index
    %115 = vector.load %arg7[%114, %c0_56] : memref<64x34xf32, #tpu.memory_space<vmem>>, vector<4x34xf32>
    %c0_57 = arith.constant 0 : index
    %c442 = arith.constant 442 : index
    %116 = vector.load %arg8[%c0_57, %c442] : memref<4x1158xf32, #tpu.memory_space<vmem>>, vector<4x34xf32>
    tpu.vector_store %arg8[%c0_57, %c442], %115 {strides = array<i32>} : memref<4x1158xf32, #tpu.memory_space<vmem>>, vector<4x34xf32>,
    %c32_i32_58 = arith.constant 32 : i32
    %117 = arith.muli %arg1, %c32_i32_58 : i32
    %c14_i32 = arith.constant 14 : i32
    %118 = arith.addi %117, %c14_i32 : i32
    %119 = arith.index_cast %118 : i32 to index
    %120 = memref.load %arg2[%119] : memref<34xi32, #tpu.memory_space<smem>>
    %c4_i32_59 = arith.constant 4 : i32
    %121 = arith.muli %120, %c4_i32_59 : i32
    %122 = arith.index_cast %121 : i32 to index
    %c0_60 = arith.constant 0 : index
    %123 = vector.load %arg7[%122, %c0_60] : memref<64x34xf32, #tpu.memory_space<vmem>>, vector<4x34xf32>
    %c0_61 = arith.constant 0 : index
    %c476 = arith.constant 476 : index
    %124 = vector.load %arg8[%c0_61, %c476] : memref<4x1158xf32, #tpu.memory_space<vmem>>, vector<4x34xf32>
    tpu.vector_store %arg8[%c0_61, %c476], %123 {strides = array<i32>} : memref<4x1158xf32, #tpu.memory_space<vmem>>, vector<4x34xf32>,
    %c32_i32_62 = arith.constant 32 : i32
    %125 = arith.muli %arg1, %c32_i32_62 : i32
    %c15_i32 = arith.constant 15 : i32
    %126 = arith.addi %125, %c15_i32 : i32
    %127 = arith.index_cast %126 : i32 to index
    %128 = memref.load %arg2[%127] : memref<34xi32, #tpu.memory_space<smem>>
    %c4_i32_63 = arith.constant 4 : i32
    %129 = arith.muli %128, %c4_i32_63 : i32
    %130 = arith.index_cast %129 : i32 to index
    %c0_64 = arith.constant 0 : index
    %131 = vector.load %arg7[%130, %c0_64] : memref<64x34xf32, #tpu.memory_space<vmem>>, vector<4x34xf32>
    %c0_65 = arith.constant 0 : index
    %c510 = arith.constant 510 : index
    %132 = vector.load %arg8[%c0_65, %c510] : memref<4x1158xf32, #tpu.memory_space<vmem>>, vector<4x34xf32>
    tpu.vector_store %arg8[%c0_65, %c510], %131 {strides = array<i32>} : memref<4x1158xf32, #tpu.memory_space<vmem>>, vector<4x34xf32>,
    %c32_i32_66 = arith.constant 32 : i32
    %133 = arith.muli %arg1, %c32_i32_66 : i32
    %c16_i32 = arith.constant 16 : i32
    %134 = arith.addi %133, %c16_i32 : i32
    %135 = arith.index_cast %134 : i32 to index
    %136 = memref.load %arg2[%135] : memref<34xi32, #tpu.memory_space<smem>>
    %c4_i32_67 = arith.constant 4 : i32
    %137 = arith.muli %136, %c4_i32_67 : i32
    %138 = arith.index_cast %137 : i32 to index
    %c0_68 = arith.constant 0 : index
    %139 = vector.load %arg7[%138, %c0_68] : memref<64x34xf32, #tpu.memory_space<vmem>>, vector<4x34xf32>
    %c0_69 = arith.constant 0 : index
    %c544 = arith.constant 544 : index
    %140 = vector.load %arg8[%c0_69, %c544] : memref<4x1158xf32, #tpu.memory_space<vmem>>, vector<4x34xf32>
    tpu.vector_store %arg8[%c0_69, %c544], %139 {strides = array<i32>} : memref<4x1158xf32, #tpu.memory_space<vmem>>, vector<4x34xf32>,
    %c32_i32_70 = arith.constant 32 : i32
    %141 = arith.muli %arg1, %c32_i32_70 : i32
    %c17_i32 = arith.constant 17 : i32
    %142 = arith.addi %141, %c17_i32 : i32
    %143 = arith.index_cast %142 : i32 to index
    %144 = memref.load %arg2[%143] : memref<34xi32, #tpu.memory_space<smem>>
    %c4_i32_71 = arith.constant 4 : i32
    %145 = arith.muli %144, %c4_i32_71 : i32
    %146 = arith.index_cast %145 : i32 to index
    %c0_72 = arith.constant 0 : index
    %147 = vector.load %arg7[%146, %c0_72] : memref<64x34xf32, #tpu.memory_space<vmem>>, vector<4x34xf32>
    %c0_73 = arith.constant 0 : index
    %c578 = arith.constant 578 : index
    %148 = vector.load %arg8[%c0_73, %c578] : memref<4x1158xf32, #tpu.memory_space<vmem>>, vector<4x34xf32>
    tpu.vector_store %arg8[%c0_73, %c578], %147 {strides = array<i32>} : memref<4x1158xf32, #tpu.memory_space<vmem>>, vector<4x34xf32>,
    %c32_i32_74 = arith.constant 32 : i32
    %149 = arith.muli %arg1, %c32_i32_74 : i32
    %c18_i32 = arith.constant 18 : i32
    %150 = arith.addi %149, %c18_i32 : i32
    %151 = arith.index_cast %150 : i32 to index
    %152 = memref.load %arg2[%151] : memref<34xi32, #tpu.memory_space<smem>>
    %c4_i32_75 = arith.constant 4 : i32
    %153 = arith.muli %152, %c4_i32_75 : i32
    %154 = arith.index_cast %153 : i32 to index
    %c0_76 = arith.constant 0 : index
    %155 = vector.load %arg7[%154, %c0_76] : memref<64x34xf32, #tpu.memory_space<vmem>>, vector<4x34xf32>
    %c0_77 = arith.constant 0 : index
    %c612 = arith.constant 612 : index
    %156 = vector.load %arg8[%c0_77, %c612] : memref<4x1158xf32, #tpu.memory_space<vmem>>, vector<4x34xf32>
    tpu.vector_store %arg8[%c0_77, %c612], %155 {strides = array<i32>} : memref<4x1158xf32, #tpu.memory_space<vmem>>, vector<4x34xf32>,
    %c32_i32_78 = arith.constant 32 : i32
    %157 = arith.muli %arg1, %c32_i32_78 : i32
    %c19_i32 = arith.constant 19 : i32
    %158 = arith.addi %157, %c19_i32 : i32
    %159 = arith.index_cast %158 : i32 to index
    %160 = memref.load %arg2[%159] : memref<34xi32, #tpu.memory_space<smem>>
    %c4_i32_79 = arith.constant 4 : i32
    %161 = arith.muli %160, %c4_i32_79 : i32
    %162 = arith.index_cast %161 : i32 to index
    %c0_80 = arith.constant 0 : index
    %163 = vector.load %arg7[%162, %c0_80] : memref<64x34xf32, #tpu.memory_space<vmem>>, vector<4x34xf32>
    %c0_81 = arith.constant 0 : index
    %c646 = arith.constant 646 : index
    %164 = vector.load %arg8[%c0_81, %c646] : memref<4x1158xf32, #tpu.memory_space<vmem>>, vector<4x34xf32>
    tpu.vector_store %arg8[%c0_81, %c646], %163 {strides = array<i32>} : memref<4x1158xf32, #tpu.memory_space<vmem>>, vector<4x34xf32>,
    %c32_i32_82 = arith.constant 32 : i32
    %165 = arith.muli %arg1, %c32_i32_82 : i32
    %c20_i32 = arith.constant 20 : i32
    %166 = arith.addi %165, %c20_i32 : i32
    %167 = arith.index_cast %166 : i32 to index
    %168 = memref.load %arg2[%167] : memref<34xi32, #tpu.memory_space<smem>>
    %c4_i32_83 = arith.constant 4 : i32
    %169 = arith.muli %168, %c4_i32_83 : i32
    %170 = arith.index_cast %169 : i32 to index
    %c0_84 = arith.constant 0 : index
    %171 = vector.load %arg7[%170, %c0_84] : memref<64x34xf32, #tpu.memory_space<vmem>>, vector<4x34xf32>
    %c0_85 = arith.constant 0 : index
    %c680 = arith.constant 680 : index
    %172 = vector.load %arg8[%c0_85, %c680] : memref<4x1158xf32, #tpu.memory_space<vmem>>, vector<4x34xf32>
    tpu.vector_store %arg8[%c0_85, %c680], %171 {strides = array<i32>} : memref<4x1158xf32, #tpu.memory_space<vmem>>, vector<4x34xf32>,
    %c32_i32_86 = arith.constant 32 : i32
    %173 = arith.muli %arg1, %c32_i32_86 : i32
    %c21_i32 = arith.constant 21 : i32
    %174 = arith.addi %173, %c21_i32 : i32
    %175 = arith.index_cast %174 : i32 to index
    %176 = memref.load %arg2[%175] : memref<34xi32, #tpu.memory_space<smem>>
    %c4_i32_87 = arith.constant 4 : i32
    %177 = arith.muli %176, %c4_i32_87 : i32
    %178 = arith.index_cast %177 : i32 to index
    %c0_88 = arith.constant 0 : index
    %179 = vector.load %arg7[%178, %c0_88] : memref<64x34xf32, #tpu.memory_space<vmem>>, vector<4x34xf32>
    %c0_89 = arith.constant 0 : index
    %c714 = arith.constant 714 : index
    %180 = vector.load %arg8[%c0_89, %c714] : memref<4x1158xf32, #tpu.memory_space<vmem>>, vector<4x34xf32>
    tpu.vector_store %arg8[%c0_89, %c714], %179 {strides = array<i32>} : memref<4x1158xf32, #tpu.memory_space<vmem>>, vector<4x34xf32>,
    %c32_i32_90 = arith.constant 32 : i32
    %181 = arith.muli %arg1, %c32_i32_90 : i32
    %c22_i32 = arith.constant 22 : i32
    %182 = arith.addi %181, %c22_i32 : i32
    %183 = arith.index_cast %182 : i32 to index
    %184 = memref.load %arg2[%183] : memref<34xi32, #tpu.memory_space<smem>>
    %c4_i32_91 = arith.constant 4 : i32
    %185 = arith.muli %184, %c4_i32_91 : i32
    %186 = arith.index_cast %185 : i32 to index
    %c0_92 = arith.constant 0 : index
    %187 = vector.load %arg7[%186, %c0_92] : memref<64x34xf32, #tpu.memory_space<vmem>>, vector<4x34xf32>
    %c0_93 = arith.constant 0 : index
    %c748 = arith.constant 748 : index
    %188 = vector.load %arg8[%c0_93, %c748] : memref<4x1158xf32, #tpu.memory_space<vmem>>, vector<4x34xf32>
    tpu.vector_store %arg8[%c0_93, %c748], %187 {strides = array<i32>} : memref<4x1158xf32, #tpu.memory_space<vmem>>, vector<4x34xf32>,
    %c32_i32_94 = arith.constant 32 : i32
    %189 = arith.muli %arg1, %c32_i32_94 : i32
    %c23_i32 = arith.constant 23 : i32
    %190 = arith.addi %189, %c23_i32 : i32
    %191 = arith.index_cast %190 : i32 to index
    %192 = memref.load %arg2[%191] : memref<34xi32, #tpu.memory_space<smem>>
    %c4_i32_95 = arith.constant 4 : i32
    %193 = arith.muli %192, %c4_i32_95 : i32
    %194 = arith.index_cast %193 : i32 to index
    %c0_96 = arith.constant 0 : index
    %195 = vector.load %arg7[%194, %c0_96] : memref<64x34xf32, #tpu.memory_space<vmem>>, vector<4x34xf32>
    %c0_97 = arith.constant 0 : index
    %c782 = arith.constant 782 : index
    %196 = vector.load %arg8[%c0_97, %c782] : memref<4x1158xf32, #tpu.memory_space<vmem>>, vector<4x34xf32>
    tpu.vector_store %arg8[%c0_97, %c782], %195 {strides = array<i32>} : memref<4x1158xf32, #tpu.memory_space<vmem>>, vector<4x34xf32>,
    %c32_i32_98 = arith.constant 32 : i32
    %197 = arith.muli %arg1, %c32_i32_98 : i32
    %c24_i32 = arith.constant 24 : i32
    %198 = arith.addi %197, %c24_i32 : i32
    %199 = arith.index_cast %198 : i32 to index
    %200 = memref.load %arg2[%199] : memref<34xi32, #tpu.memory_space<smem>>
    %c4_i32_99 = arith.constant 4 : i32
    %201 = arith.muli %200, %c4_i32_99 : i32
    %202 = arith.index_cast %201 : i32 to index
    %c0_100 = arith.constant 0 : index
    %203 = vector.load %arg7[%202, %c0_100] : memref<64x34xf32, #tpu.memory_space<vmem>>, vector<4x34xf32>
    %c0_101 = arith.constant 0 : index
    %c816 = arith.constant 816 : index
    %204 = vector.load %arg8[%c0_101, %c816] : memref<4x1158xf32, #tpu.memory_space<vmem>>, vector<4x34xf32>
    tpu.vector_store %arg8[%c0_101, %c816], %203 {strides = array<i32>} : memref<4x1158xf32, #tpu.memory_space<vmem>>, vector<4x34xf32>,
    %c32_i32_102 = arith.constant 32 : i32
    %205 = arith.muli %arg1, %c32_i32_102 : i32
    %c25_i32 = arith.constant 25 : i32
    %206 = arith.addi %205, %c25_i32 : i32
    %207 = arith.index_cast %206 : i32 to index
    %208 = memref.load %arg2[%207] : memref<34xi32, #tpu.memory_space<smem>>
    %c4_i32_103 = arith.constant 4 : i32
    %209 = arith.muli %208, %c4_i32_103 : i32
    %210 = arith.index_cast %209 : i32 to index
    %c0_104 = arith.constant 0 : index
    %211 = vector.load %arg7[%210, %c0_104] : memref<64x34xf32, #tpu.memory_space<vmem>>, vector<4x34xf32>
    %c0_105 = arith.constant 0 : index
    %c850 = arith.constant 850 : index
    %212 = vector.load %arg8[%c0_105, %c850] : memref<4x1158xf32, #tpu.memory_space<vmem>>, vector<4x34xf32>
    tpu.vector_store %arg8[%c0_105, %c850], %211 {strides = array<i32>} : memref<4x1158xf32, #tpu.memory_space<vmem>>, vector<4x34xf32>,
    %c32_i32_106 = arith.constant 32 : i32
    %213 = arith.muli %arg1, %c32_i32_106 : i32
    %c26_i32 = arith.constant 26 : i32
    %214 = arith.addi %213, %c26_i32 : i32
    %215 = arith.index_cast %214 : i32 to index
    %216 = memref.load %arg2[%215] : memref<34xi32, #tpu.memory_space<smem>>
    %c4_i32_107 = arith.constant 4 : i32
    %217 = arith.muli %216, %c4_i32_107 : i32
    %218 = arith.index_cast %217 : i32 to index
    %c0_108 = arith.constant 0 : index
    %219 = vector.load %arg7[%218, %c0_108] : memref<64x34xf32, #tpu.memory_space<vmem>>, vector<4x34xf32>
    %c0_109 = arith.constant 0 : index
    %c884 = arith.constant 884 : index
    %220 = vector.load %arg8[%c0_109, %c884] : memref<4x1158xf32, #tpu.memory_space<vmem>>, vector<4x34xf32>
    tpu.vector_store %arg8[%c0_109, %c884], %219 {strides = array<i32>} : memref<4x1158xf32, #tpu.memory_space<vmem>>, vector<4x34xf32>,
    %c32_i32_110 = arith.constant 32 : i32
    %221 = arith.muli %arg1, %c32_i32_110 : i32
    %c27_i32 = arith.constant 27 : i32
    %222 = arith.addi %221, %c27_i32 : i32
    %223 = arith.index_cast %222 : i32 to index
    %224 = memref.load %arg2[%223] : memref<34xi32, #tpu.memory_space<smem>>
    %c4_i32_111 = arith.constant 4 : i32
    %225 = arith.muli %224, %c4_i32_111 : i32
    %226 = arith.index_cast %225 : i32 to index
    %c0_112 = arith.constant 0 : index
    %227 = vector.load %arg7[%226, %c0_112] : memref<64x34xf32, #tpu.memory_space<vmem>>, vector<4x34xf32>
    %c0_113 = arith.constant 0 : index
    %c918 = arith.constant 918 : index
    %228 = vector.load %arg8[%c0_113, %c918] : memref<4x1158xf32, #tpu.memory_space<vmem>>, vector<4x34xf32>
    tpu.vector_store %arg8[%c0_113, %c918], %227 {strides = array<i32>} : memref<4x1158xf32, #tpu.memory_space<vmem>>, vector<4x34xf32>,
    %c32_i32_114 = arith.constant 32 : i32
    %229 = arith.muli %arg1, %c32_i32_114 : i32
    %c28_i32 = arith.constant 28 : i32
    %230 = arith.addi %229, %c28_i32 : i32
    %231 = arith.index_cast %230 : i32 to index
    %232 = memref.load %arg2[%231] : memref<34xi32, #tpu.memory_space<smem>>
    %c4_i32_115 = arith.constant 4 : i32
    %233 = arith.muli %232, %c4_i32_115 : i32
    %234 = arith.index_cast %233 : i32 to index
    %c0_116 = arith.constant 0 : index
    %235 = vector.load %arg7[%234, %c0_116] : memref<64x34xf32, #tpu.memory_space<vmem>>, vector<4x34xf32>
    %c0_117 = arith.constant 0 : index
    %c952 = arith.constant 952 : index
    %236 = vector.load %arg8[%c0_117, %c952] : memref<4x1158xf32, #tpu.memory_space<vmem>>, vector<4x34xf32>
    tpu.vector_store %arg8[%c0_117, %c952], %235 {strides = array<i32>} : memref<4x1158xf32, #tpu.memory_space<vmem>>, vector<4x34xf32>,
    %c32_i32_118 = arith.constant 32 : i32
    %237 = arith.muli %arg1, %c32_i32_118 : i32
    %c29_i32 = arith.constant 29 : i32
    %238 = arith.addi %237, %c29_i32 : i32
    %239 = arith.index_cast %238 : i32 to index
    %240 = memref.load %arg2[%239] : memref<34xi32, #tpu.memory_space<smem>>
    %c4_i32_119 = arith.constant 4 : i32
    %241 = arith.muli %240, %c4_i32_119 : i32
    %242 = arith.index_cast %241 : i32 to index
    %c0_120 = arith.constant 0 : index
    %243 = vector.load %arg7[%242, %c0_120] : memref<64x34xf32, #tpu.memory_space<vmem>>, vector<4x34xf32>
    %c0_121 = arith.constant 0 : index
    %c986 = arith.constant 986 : index
    %244 = vector.load %arg8[%c0_121, %c986] : memref<4x1158xf32, #tpu.memory_space<vmem>>, vector<4x34xf32>
    tpu.vector_store %arg8[%c0_121, %c986], %243 {strides = array<i32>} : memref<4x1158xf32, #tpu.memory_space<vmem>>, vector<4x34xf32>,
    %c32_i32_122 = arith.constant 32 : i32
    %245 = arith.muli %arg1, %c32_i32_122 : i32
    %c30_i32 = arith.constant 30 : i32
    %246 = arith.addi %245, %c30_i32 : i32
    %247 = arith.index_cast %246 : i32 to index
    %248 = memref.load %arg2[%247] : memref<34xi32, #tpu.memory_space<smem>>
    %c4_i32_123 = arith.constant 4 : i32
    %249 = arith.muli %248, %c4_i32_123 : i32
    %250 = arith.index_cast %249 : i32 to index
    %c0_124 = arith.constant 0 : index
    %251 = vector.load %arg7[%250, %c0_124] : memref<64x34xf32, #tpu.memory_space<vmem>>, vector<4x34xf32>
    %c0_125 = arith.constant 0 : index
    %c1020 = arith.constant 1020 : index
    %252 = vector.load %arg8[%c0_125, %c1020] : memref<4x1158xf32, #tpu.memory_space<vmem>>, vector<4x34xf32>
    tpu.vector_store %arg8[%c0_125, %c1020], %251 {strides = array<i32>} : memref<4x1158xf32, #tpu.memory_space<vmem>>, vector<4x34xf32>,
    %c32_i32_126 = arith.constant 32 : i32
    %253 = arith.muli %arg1, %c32_i32_126 : i32
    %c31_i32 = arith.constant 31 : i32
    %254 = arith.addi %253, %c31_i32 : i32
    %255 = arith.index_cast %254 : i32 to index
    %256 = memref.load %arg2[%255] : memref<34xi32, #tpu.memory_space<smem>>
    %c4_i32_127 = arith.constant 4 : i32
    %257 = arith.muli %256, %c4_i32_127 : i32
    %258 = arith.index_cast %257 : i32 to index
    %c0_128 = arith.constant 0 : index
    %259 = vector.load %arg7[%258, %c0_128] : memref<64x34xf32, #tpu.memory_space<vmem>>, vector<4x34xf32>
    %c0_129 = arith.constant 0 : index
    %c1054 = arith.constant 1054 : index
    %260 = vector.load %arg8[%c0_129, %c1054] : memref<4x1158xf32, #tpu.memory_space<vmem>>, vector<4x34xf32>
    tpu.vector_store %arg8[%c0_129, %c1054], %259 {strides = array<i32>} : memref<4x1158xf32, #tpu.memory_space<vmem>>, vector<4x34xf32>,
    %c32_i32_130 = arith.constant 32 : i32
    %261 = arith.muli %arg1, %c32_i32_130 : i32
    %c32_i32_131 = arith.constant 32 : i32
    %262 = arith.addi %261, %c32_i32_131 : i32
    %263 = arith.index_cast %262 : i32 to index
    %264 = memref.load %arg2[%263] : memref<34xi32, #tpu.memory_space<smem>>
    %c4_i32_132 = arith.constant 4 : i32
    %265 = arith.muli %264, %c4_i32_132 : i32
    %266 = arith.index_cast %265 : i32 to index
    %c0_133 = arith.constant 0 : index
    %267 = vector.load %arg7[%266, %c0_133] : memref<64x34xf32, #tpu.memory_space<vmem>>, vector<4x34xf32>
    %c0_134 = arith.constant 0 : index
    %c1088 = arith.constant 1088 : index
    %268 = vector.load %arg8[%c0_134, %c1088] : memref<4x1158xf32, #tpu.memory_space<vmem>>, vector<4x34xf32>
    tpu.vector_store %arg8[%c0_134, %c1088], %267 {strides = array<i32>} : memref<4x1158xf32, #tpu.memory_space<vmem>>, vector<4x34xf32>,
    %c32_i32_135 = arith.constant 32 : i32
    %269 = arith.muli %arg1, %c32_i32_135 : i32
    %c33_i32 = arith.constant 33 : i32
    %270 = arith.addi %269, %c33_i32 : i32
    %271 = arith.index_cast %270 : i32 to index
    %272 = memref.load %arg2[%271] : memref<34xi32, #tpu.memory_space<smem>>
    %c4_i32_136 = arith.constant 4 : i32
    %273 = arith.muli %272, %c4_i32_136 : i32
    %274 = arith.index_cast %273 : i32 to index
    %c0_137 = arith.constant 0 : index
    %275 = vector.load %arg7[%274, %c0_137] : memref<64x34xf32, #tpu.memory_space<vmem>>, vector<4x34xf32>
    %c0_138 = arith.constant 0 : index
    %c1122 = arith.constant 1122 : index
    %276 = vector.load %arg8[%c0_138, %c1122] : memref<4x1158xf32, #tpu.memory_space<vmem>>, vector<4x34xf32>
    tpu.vector_store %arg8[%c0_138, %c1122], %275 {strides = array<i32>} : memref<4x1158xf32, #tpu.memory_space<vmem>>, vector<4x34xf32>,
    %c0_139 = arith.constant 0 : index
    %c0_140 = arith.constant 0 : index
    %277 = vector.load %arg8[%c0_139, %c0_140] : memref<4x1158xf32, #tpu.memory_space<vmem>>, vector<4x1088xf32>
    %c0_141 = arith.constant 0 : index
    %c1 = arith.constant 1 : index
    %278 = vector.load %arg8[%c0_141, %c1] : memref<4x1158xf32, #tpu.memory_space<vmem>>, vector<4x1088xf32>
    %c0_142 = arith.constant 0 : index
    %c2 = arith.constant 2 : index
    %279 = vector.load %arg8[%c0_142, %c2] : memref<4x1158xf32, #tpu.memory_space<vmem>>, vector<4x1088xf32>
    %c0_143 = arith.constant 0 : index
    %c34_144 = arith.constant 34 : index
    %280 = vector.load %arg8[%c0_143, %c34_144] : memref<4x1158xf32, #tpu.memory_space<vmem>>, vector<4x1088xf32>
    %c0_145 = arith.constant 0 : index
    %c35 = arith.constant 35 : index
    %281 = vector.load %arg8[%c0_145, %c35] : memref<4x1158xf32, #tpu.memory_space<vmem>>, vector<4x1088xf32>
    %c0_146 = arith.constant 0 : index
    %c36 = arith.constant 36 : index
    %282 = vector.load %arg8[%c0_146, %c36] : memref<4x1158xf32, #tpu.memory_space<vmem>>, vector<4x1088xf32>
    %c0_147 = arith.constant 0 : index
    %c68_148 = arith.constant 68 : index
    %283 = vector.load %arg8[%c0_147, %c68_148] : memref<4x1158xf32, #tpu.memory_space<vmem>>, vector<4x1088xf32>
    %c0_149 = arith.constant 0 : index
    %c69 = arith.constant 69 : index
    %284 = vector.load %arg8[%c0_149, %c69] : memref<4x1158xf32, #tpu.memory_space<vmem>>, vector<4x1088xf32>
    %c0_150 = arith.constant 0 : index
    %c70 = arith.constant 70 : index
    %285 = vector.load %arg8[%c0_150, %c70] : memref<4x1158xf32, #tpu.memory_space<vmem>>, vector<4x1088xf32>
    %286 = tpu.concatenate %277, %278, %279, %280, %281, %282, %283, %284, %285 in 0 : vector<4x1088xf32>, vector<4x1088xf32>, vector<4x1088xf32>, vector<4x1088xf32>, vector<4x1088xf32>, vector<4x1088xf32>, vector<4x1088xf32>, vector<4x1088xf32>, vector<4x1088xf32> -> vector<36x1088xf32>
    %c0_151 = arith.constant 0 : index
    %c0_152 = arith.constant 0 : index
    %287 = vector.load %arg5[%c0_151, %c0_152] : memref<8x36xf32, #tpu.memory_space<vmem>>, vector<8x36xf32>
    %cst_153 = arith.constant dense<0.000000e+00> : vector<8x1088xf32>
    %288 = tpu.matmul %287, %286, %cst_153 {dimension_numbers = #tpu.dot_dimension_numbers<[1], [0], [0], [1], [0, 0, 1, 1], [], []>} : vector<8x36xf32>, vector<36x1088xf32>, vector<8x1088xf32> -> vector<8x1088xf32>
    %c0_154 = arith.constant 0 : index
    %c0_155 = arith.constant 0 : index
    %c0_156 = arith.constant 0 : index
    %289 = vector.load %arg6[%c0_154, %c0_155, %c0_156] : memref<1x8x1088xf32, #tpu.memory_space<vmem>>, vector<1x8x1088xf32>
    %290 = vector.shape_cast %289 : vector<1x8x1088xf32> to vector<8x1088xf32>
    %291 = vector.shape_cast %288 : vector<8x1088xf32> to vector<1x8x1088xf32>
    tpu.vector_store %arg6[%c0_154, %c0_155, %c0_156], %291 {strides = array<i32>} : memref<1x8x1088xf32, #tpu.memory_space<vmem>>, vector<1x8x1088xf32>,
    return
  }
  func.func @transform_0(%arg0: i32, %arg1: i32, %arg2: memref<34xi32, #tpu.memory_space<smem>>) -> (i32, i32, i32) {
    %c0_i32 = arith.constant 0 : i32
    %c0_i32_0 = arith.constant 0 : i32
    %c0_i32_1 = arith.constant 0 : i32
    return %arg0, %c0_i32, %c0_i32_0 : i32, i32, i32
  }
  func.func @transform_1(%arg0: i32, %arg1: i32, %arg2: memref<34xi32, #tpu.memory_space<smem>>) -> (i32, i32) {
    %c0_i32 = arith.constant 0 : i32
    %c0_i32_0 = arith.constant 0 : i32
    %c0_i32_1 = arith.constant 0 : i32
    return %c0_i32, %c0_i32_0 : i32, i32
  }
  func.func @transform_2(%arg0: i32, %arg1: i32, %arg2: memref<34xi32, #tpu.memory_space<smem>>) -> (i32, i32) {
    %c0_i32 = arith.constant 0 : i32
    %c0_i32_0 = arith.constant 0 : i32
    %c0_i32_1 = arith.constant 0 : i32
    return %c0_i32, %c0_i32_0 : i32, i32
  }
  func.func @transform_3(%arg0: i32, %arg1: i32, %arg2: memref<34xi32, #tpu.memory_space<smem>>) -> (i32, i32, i32) {
    %c0_i32 = arith.constant 0 : i32
    %c0_i32_0 = arith.constant 0 : i32
    return %arg0, %c0_i32, %arg1 : i32, i32, i32
  }
}

</mosaic_0001>

<bundles_post_ra>
// kernel: tpu_custom_call.1
= control target key start
LH: loop header
LB: loop body
LE: loop exit
PB: predicated region body
PF: predicated region fallthrough
CT: control target
= control target key end

     0   :  { %s2934_s0 = inlined_call_operand.vmem [shape: s32[34], index: 0, kind: input, shape index: {}]   ;;  %s2935_s1 = inlined_call_operand.vmem [shape: f32[2,64,16], index: 1, kind: input, shape index: {}]   ;;  %s2936_s2 = inlined_call_operand.vmem [shape: f32[16,34], index: 2, kind: input, shape index: {}]   ;;  %s2937_s3 = inlined_call_operand.vmem [shape: f32[8,36], index: 3, kind: input, shape index: {}]   ;;  %s2938_s4 = inlined_call_operand.hbm [shape: f32[2,8,1088], index: 4, kind: output, shape index: {}]  }
   0x1   :  { %2943 = sst [smem:[#allocation15_spill]] %s2935_s1  ;;  %s9_s17 = sshll.u32 %s2934_s0, 4  ;;  %s10_s17 = int_to_ptr.vmem [resolvable:$true] %s9_s17 }
   0x2   :  { %2944 = sst [smem:[#allocation16_spill]] %s2936_s2  ;;  %s2092_s18 = scalar_lea.vmem %s10_s17, 16 }
   0x3   :  { %p2093_p0 = scmp.ne.s32.totalorder %s10_s17, %s2092_s18  ;;  %p2097_p1 = scmp.lt.s32.totalorder %s10_s17, %s10_s17 }
   0x4   :  { %p2098_p2 = scmp.lt.s32.totalorder %s2092_s18, %s2092_s18 }
   0x6   :  { %p2099_p3 = por %p2098_p2, %p2097_p1 }
   0x8   :  { %p2100_p4 = pnand %p2099_p3, %p2093_p0 }
   0xa   :  { %2103 = shalt.err (!%p2100_p4)  }
   0xb   :  { %s2186_s19 = smov [#allocation5]  }
   0xc   :  { %12 = dma.vmem_to_smem %s10_s17, 16, %s2186_s19, [#allocation4] }
   0xd   :  { %2156 = dma.done.wait [#allocation4], 16 }
   0xe   :  { %2157 = vsyncadd [#allocation4], 4294967280 }
   0xf   :  { %14 = sfence }
  0x10   :  { %15 = vsyncpa [#allocation7], 0 }
  0x11   :  { %17 = vsyncpa [#allocation7 + $0x1], 0  ;;  %s2257_s20 = smov 0   ;;  %s2259_s21 = smov 0  }
  0x12   :  { %s2261_s0 = smov 0   ;;  %s2263_s22 = smov 0  }
  0x13   :  { %s2265_s23 = smov 0   ;;  %s2267_s24 = smov 0  }
  0x14 LB: > { %2945 = sst [smem:[#allocation10_spill]] %s2172_s0  ;;  %s1654_s25 = sadd.s32 4294967295, %s2184_s24   ;;  %s2184_s24 = sphi %s2267_s24, %s23_s24   ;;  %s2180_s23 = sphi %s2265_s23, %s2958_s23   ;;  %s2176_s22 = sphi %s2263_s22, %s2957_s22   ;;  %s2172_s0 = sphi %s2261_s0, %s2956_s0   ;;  %s2168_s21 = sphi %s2259_s21, %s2960_s21   ;;  %s2164_s20 = sphi %s2257_s20, %s2959_s20  }
  0x15   : > { %2946 = sst [smem:[#allocation11_spill]] %s2180_s23  ;;  %s1655_s26 = sadd.s32 4294967294, %s2184_s24  }
  0x16   : > { %s35_s27 = sadd.s32 1, %s2180_s23  ;;  %s112_s28 = sadd.s32 1, %s2172_s0 }
  0x17   : > { %p37_p5 = scmp.ge.s32.totalorder %s35_s27, 2  ;;  %p122_p6 = scmp.ne.s32.totalorder %s2172_s0, %s2168_s21 }
  0x18   : > { %p123_p7 = scmp.eq.s32.totalorder %s1654_s25, 1  ;;  %p128_p8 = scmp.ne.s32.totalorder %s2168_s21, %s2164_s20 }
  0x19   : > { %s2962_s27 = smov (%p37_p5, %s35_s27), 0  ;;  %p129_p10 = scmp.eq.s32.totalorder %s1655_s26, 1 }
  0x1a   : > { %2947 = sst [smem:[#allocation12_spill]] %s2962_s27  ;;  %p2297_p9 = por %p123_p7, %p122_p6 }
  0x1b   : > { %s107_s30 = ssub.s32 %s2180_s23, %s2962_s27  ;;  %p1658_p11 = scmp.ge.s32.totalorder %s2184_s24, 1 }
  0x1c   : > { %p110_p12 = scmp.eq.s32.totalorder %s107_s30, 0  ;;  %p2304_p13 = por %p129_p10, %p128_p8 }
  0x1d   : > { %p161_p0 = scmp.lt.s32.totalorder %s2184_s24, 3 }
  0x1e   : > { %s2949_s5 = scalar_select %p2304_p13, 1, 0 }
  0x1f   : > { %s2310_s6 = scalar_select %p110_p12, %s2172_s0, %s112_s28  }
  0x20   : > { %2950 = sst [smem:[#allocation13_spill]] %s2949_s5  ;;  %p162_p1 = pnand %p1658_p11, %p161_p0 }
  0x21   : > { %2951 = sst [smem:[#allocation14_spill]] %s2310_s6  ;;  %s2952_s2 = sld [smem:[#allocation16_spill]] (!%p162_p1)  ;;  %vm205_vm0 = vcmask (!%p162_p1), 130048   ;;  %vm335_vm1 = vcmask (!%p162_p1), 277504   ;;  %vm351_vm2 = vcmask (!%p162_p1), 273408   ;;  %vm344_vm3 = vcmask (!%p162_p1), 44064  }
  0x22   : > { %165 = sbr.rel (%p162_p1) target bundleno = 868 (0x364), region = 32  ;;  %p185_p2 = scmp.lt.s32.totalorder (!%p162_p1), %s2176_s22, 1  ;;  %v2213_v46 = vmov (!%p162_p1), 0.0   ;;  %vm387_vm4 = vcmask (!%p162_p1), 1044272   ;;  %vm388_vm5 = vcmask (!%p162_p1), 64516   ;;  %vm362_vm6 = vcmask (!%p162_p1), 552208  }
  0x23   : > { %s2953_s1 = sld [smem:[#allocation15_spill]] (!%p162_p1)  ;;  %s1674_s16 = sld [smem:[#allocation5 + $0x3]] (!%p162_p1)  ;;  %345 = vst.msk [vmem:[#allocation3 + $0x24] sm:$0xf] (!%p162_p1), %vm344_vm3, %v2213_v46  ;;  %1199 = vmatprep.mubr.f32.mxu1 (!%p162_p1), %v2213_v46  ;;  %vm384_vm7 = vcmask (!%p162_p1), 834560   ;;  %vm373_vm8 = vcmask (!%p162_p1), 831008   ;;  %vm389_vm9 = vmor (!%p162_p1), %vm388_vm5, %vm387_vm4 }
  0x24   : > { %s1672_s17 = sld [smem:[#allocation5 + $0x2]] (!%p162_p1)  ;;  %s2336_s18 = sld [smem:[#allocation5 + $0x4]] (!%p162_p1)  ;;  %vm400_vm10 = vcmask (!%p162_p1), 339008   ;;  %vm411_vm11 = vcmask (!%p162_p1), 617808   ;;  %vm436_vm12 = vcmask (!%p162_p1), 1044336   ;;  %vm437_vm13 = vcmask (!%p162_p1), 130052  }
  0x25   : > { %s2339_s19 = sld [smem:[#allocation5 + $0x1]] (!%p162_p1)  ;;  %s2341_s25 = sld [smem:[#allocation5 + $0x5]] (!%p162_p1)  ;;  %vm433_vm14 = vcmask (!%p162_p1), 900096   ;;  %vm422_vm15 = vcmask (!%p162_p1), 896608   ;;  %vm485_vm3 = vcmask (!%p162_p1), 1044400   ;;  %vm486_vm4 = vcmask (!%p162_p1), 195588  }
  0x26   : > { %s2343_s26 = sld [smem:[#allocation5 + $0x7]] (!%p162_p1)  ;;  %s2345_s28 = sld [smem:[#allocation5 + $0x8]] (!%p162_p1)  ;;  %vm482_vm5 = vcmask (!%p162_p1), 965632  }
  0x27   : > { %v203_v0 = vld [vmem:[%s2952_s2] sm:$0xff] (!%p162_p1)  ;;  %v204_v1 = vld [vmem:[%s2952_s2 + $0x8] sm:$0xff] (!%p162_p1)  ;;  %s2347_s30 = sld [smem:[#allocation5 + $0x6]] (!%p162_p1)  ;;  %s2351_s9 = sld [smem:[#allocation5 + $0x9]] (!%p162_p1) }
  0x28   : > { %v1799_v2 = vpack.c.bf16 (!%p162_p1), %v204_v1, %v203_v0  ;;  %s2353_s10 = sld [smem:[#allocation5 + $0xb]] (!%p162_p1)  ;;  %s2187_s27 = smov (!%p162_p1), 102  }
  0x29   : > { %s186_s11 = scalar_select %p185_p2, %s2176_s22, 1 }
  0x2a   : > { %1800 = vmatprep.subr.bf16.mxu0 %v1799_v2  ;;  %s1675_s7 = sshll.u32 %s1674_s16, 2  ;;  %s1673_s8 = sshll.u32 %s1672_s17, 2 }
  0x2b   : > { %1802 = vmatpush3.bf16.msra.mxu0 %v1799_v2  ;;  %s1753_s12 = sshll.u32 %s186_s11, 6  ;;  %s2355_s11 = sld [smem:[#allocation5 + $0xc]] }
  0x2c   : > { %s189_s15 = scalar_lea.vmem %s2953_s1, %s1753_s12  ;;  %s2357_s12 = sld [smem:[#allocation5 + $0xa]] }
  0x2d   : > { %v195_v3 = vld [vmem:[%s189_s15] sm:$0xff]  ;;  %v196_v4 = vld [vmem:[%s189_s15 + $0x8] sm:$0xff]  ;;  %v197_v5 = vld [vmem:[%s189_s15 + $0x10] sm:$0xff]  ;;  %s1677_s13 = sshll.u32 %s2336_s18, 2  ;;  %s1671_s14 = sshll.u32 %s2339_s19, 2 }
  0x2e   : > { %1774 = vmatprep.mubr.msk.f32.mxu0 %vm205_vm0, %v195_v3  ;;  %v198_v6 = vld [vmem:[%s189_s15 + $0x18] sm:$0xff]  ;;  %v199_v7 = vld [vmem:[%s189_s15 + $0x20] sm:$0xff]  ;;  %v200_v8 = vld [vmem:[%s189_s15 + $0x28] sm:$0xff]  ;;  %s2362_s1 = sld [smem:[#allocation5]]  ;;  %s378_s16 = scalar_lea.vmem [#allocation2], %s1675_s7 }
  0x2f   : > { %1775 = vmatmul.mubr.msk.f32.vlgmr.msra.gmra.mrb[0].mxu0 %vm205_vm0, %v196_v4  ;;  %v201_v9 = vld [vmem:[%s189_s15 + $0x30] sm:$0xff]  ;;  %v202_v10 = vld [vmem:[%s189_s15 + $0x38] sm:$0xff]  ;;  %s1679_s15 = sshll.u32 %s2341_s25, 2  ;;  %s367_s17 = scalar_lea.vmem [#allocation2], %s1673_s8 }
  0x30   : > { %1777 = vmatprep.mubr.msk.f32.mxu0 %vm205_vm0, %v197_v5  ;;  %s1683_s2 = sshll.u32 %s2343_s26, 2  ;;  %s2188_s23 = smov 68  }
  0x31   : > { %s1685_s6 = sshll.u32 %s2345_s28, 2  ;;  %s1681_s0 = sshll.u32 %s2347_s30, 2 }
  0x32   : > { %s394_s18 = scalar_lea.vmem [#allocation2], %s1677_s13  ;;  %s356_s19 = scalar_lea.vmem [#allocation2], %s1671_s14 }
  0x33   : > { %1778 = vmatmul.mubr.msk.f32.gmra.mrb[2].mxu0 %vm205_vm0, %v198_v6  ;;  %s1687_s25 = sshll.u32 %s2351_s9, 2  ;;  %s2189_s5 = smov 8  }
  0x34   : > { %1780 = vmatprep.mubr.msk.f32.mxu0 %vm205_vm0, %v199_v7  ;;  %s2190_s7 = smov 34   ;;  %s1691_s26 = sshll.u32 %s2353_s10, 2 }
  0x35   : > { %s1669_s8 = sshll.u32 %s2362_s1, 2  ;;  %s2191_s28 = smov 42  }
  0x36   : > { %s2192_s30 = smov 110   ;;  %s2371_s13 = sld [smem:[#allocation5 + $0xd]] }
  0x37   : > { %1781 = vmatmul.mubr.msk.f32.gmra.mrb[4].mxu0 %vm205_vm0, %v200_v8  ;;  %s2373_s14 = sld [smem:[#allocation5 + $0xf]]  ;;  %s416_s1 = scalar_lea.vmem [#allocation2], %s1681_s0 }
  0x38   : > { %1783 = vmatprep.mubr.msk.f32.mxu0 %vm205_vm0, %v201_v9  ;;  %s454_s0 = scalar_lea.vmem [#allocation2], %s1687_s25  ;;  %s2197_s25 = smov 24  }
  0x3b   : > { %1784 = vmatmul.mubr.msk.f32.gmra.mrb[6].mxu0 %vm205_vm0, %v202_v10  ;;  %vm438_vm0 = vmor %vm437_vm13, %vm436_vm12  ;;  %vm531_vm12 = vcmask 1031168   ;;  %vm520_vm13 = vcmask 1027808  }
  0x3c   : > { %1270 = vmatprep.mubr.f32.mxu0 %v2213_v46 }
 0x102   : > { %v1776_v11 = vpop.f32.mrb[0].mxu0 }
 0x103   : > { %337 = vst.msk [vmem:[#allocation2 + $0x8] sm:$0xff] %vm335_vm1, %v1776_v11  ;;  %v296_v12 = vpop.f32.mrb[1].mxu0 }
 0x104   : > { %336 = vst.msk [vmem:[#allocation2] sm:$0xff] %vm335_vm1, %v296_v12 }
 0x106   : > { %v1779_v13 = vpop.f32.mrb[2].mxu0 }
 0x107   : > { %339 = vst.msk [vmem:[#allocation2 + $0x18] sm:$0xff] %vm335_vm1, %v1779_v13  ;;  %v306_v14 = vpop.f32.mrb[3].mxu0 }
 0x108   : > { %338 = vst.msk [vmem:[#allocation2 + $0x10] sm:$0xff] %vm335_vm1, %v306_v14 }
 0x10a   : > { %v1782_v15 = vpop.f32.mrb[4].mxu0 }
 0x10b   : > { %341 = vst.msk [vmem:[#allocation2 + $0x28] sm:$0xff] %vm335_vm1, %v1782_v15  ;;  %v316_v16 = vpop.f32.mrb[5].mxu0 }
 0x10c   : > { %340 = vst.msk [vmem:[#allocation2 + $0x20] sm:$0xff] %vm335_vm1, %v316_v16 }
 0x10e   : > { %v1785_v17 = vpop.f32.mrb[6].mxu0 }
 0x10f   : > { %343 = vst.msk [vmem:[#allocation2 + $0x38] sm:$0xff] %vm335_vm1, %v1785_v17  ;;  %v326_v18 = vpop.f32.mrb[7].mxu0 }
 0x110   : > { %342 = vst.msk [vmem:[#allocation2 + $0x30] sm:$0xff] %vm335_vm1, %v326_v18  ;;  %vm449_vm1 = vcmask 404608  }
 0x117   : > { %v379_v19 = vld [vmem:[%s378_s16] sm:$0xf]  ;;  %s405_s16 = scalar_lea.vmem [#allocation2], %s1679_s15  ;;  %s349_s15 = scalar_lea.vmem [#allocation2], %s1669_s8 }
 0x118   : > { %v368_v20 = vld [vmem:[%s367_s17] sm:$0xf]  ;;  %381 = vrot.lane.b32.xlu0 %v379_v19, %s2187_s27  ;;  %s427_s27 = scalar_lea.vmem [#allocation2], %s1683_s2  ;;  %s443_s17 = scalar_lea.vmem [#allocation2], %s1685_s6 }
 0x119   : > { %370 = vrot.lane.b32.xlu1 %v368_v20, %s2188_s23  ;;  %v395_v21 = vld [vmem:[%s394_s18] sm:$0xf]  ;;  %s1693_s23 = sshll.u32 %s2355_s11, 2  ;;  %s2193_s2 = smov 16  }
 0x11a   : > { %v357_v22 = vld [vmem:[%s356_s19] sm:$0xf]  ;;  %s2194_s18 = smov 76   ;;  %s2376_s19 = sld [smem:[#allocation5 + $0x12]] }
 0x11b   : > { %v406_v23 = vld [vmem:[%s405_s16] sm:$0xf]  ;;  %s2380_s16 = sld [smem:[#allocation5 + $0x11]]  ;;  %s476_s6 = scalar_lea.vmem [#allocation2], %s1691_s26 }
 0x11c   : > { %359 = vrot.lane.b32.xlu0 %v357_v22, %s2190_s7  ;;  %v428_v24 = vld [vmem:[%s427_s27] sm:$0xf]  ;;  %s2378_s7 = sld [smem:[#allocation5 + $0xe]]  ;;  %s2386_s8 = sld [smem:[#allocation5 + $0x10]] }
 0x11d   : > { %397 = vrot.lane.b32.xlu1 %v395_v21, %s2189_s5  ;;  %s1689_s5 = sshll.u32 %s2357_s12, 2  ;;  %v444_v25 = vld [vmem:[%s443_s17] sm:$0xf]  ;;  %s2195_s27 = smov 50  }
 0x11e   : > { %v417_v26 = vld [vmem:[%s416_s1] sm:$0xf]  ;;  %s1699_s17 = sshll.u32 %s2373_s14, 2  ;;  %s2390_s1 = sld [smem:[#allocation5 + $0x16]] }
 0x11f   : > { %v350_v27 = vld [vmem:[%s349_s15] sm:$0xf]  ;;  %s2392_s15 = sld [smem:[#allocation5 + $0x13]]  ;;  %s492_s9 = scalar_lea.vmem [#allocation2], %s1693_s23 }
 0x120   : > { %430 = vrot.lane.b32.xlu0 %v428_v24, %s2192_s30  ;;  %352 = vst.msk [vmem:[#allocation3] sm:$0xf] %vm351_vm2, %v350_v27  ;;  %v455_v28 = vld [vmem:[%s454_s0] sm:$0xf]  ;;  %s1695_s30 = sshll.u32 %s2371_s13, 2  ;;  %s465_s10 = scalar_lea.vmem [#allocation2], %s1689_s5 }
 0x121   : > { %408 = vrot.lane.b32.xlu1 %v406_v23, %s2191_s28  ;;  %v477_v29 = vld [vmem:[%s476_s6] sm:$0xf]  ;;  %s2196_s28 = smov 118   ;;  %s2198_s26 = smov 84   ;;  %vm460_vm2 = vcmask 683408  }
 0x122   : > { %v493_v30 = vld [vmem:[%s492_s9] sm:$0xf]  ;;  %s2400_s13 = sld [smem:[#allocation5 + $0x15]]  ;;  %s2402_s14 = sld [smem:[#allocation5 + $0x14]] }
 0x123   : > { %v466_v31 = vld [vmem:[%s465_s10] sm:$0xf]  ;;  %s503_s11 = scalar_lea.vmem [#allocation2], %s1695_s30  ;;  %s525_s23 = scalar_lea.vmem [#allocation2], %s1699_s17 }
 0x124   : > { %419 = vrot.lane.b32.xlu0 %v417_v26, %s2194_s18  ;;  %s1697_s18 = sshll.u32 %s2378_s7, 2  ;;  %v504_v32 = vld [vmem:[%s503_s11] sm:$0xf]  ;;  %s1703_s12 = sshll.u32 %s2380_s16, 2 }
 0x125   : > { %446 = vrot.lane.b32.xlu1 %v444_v25, %s2193_s2  ;;  %s1705_s2 = sshll.u32 %s2376_s19, 2  ;;  %v526_v33 = vld [vmem:[%s525_s23] sm:$0xf]  ;;  %s1701_s0 = sshll.u32 %s2386_s8, 2 }
 0x126   : > { %s2199_s5 = smov 58   ;;  %s2200_s6 = smov 126  }
 0x127   : > { %s563_s19 = scalar_lea.vmem [#allocation2], %s1705_s2  ;;  %s514_s7 = scalar_lea.vmem [#allocation2], %s1697_s18 }
 0x128   : > { %479 = vrot.lane.b32.xlu0 %v477_v29, %s2196_s28  ;;  %v564_v34 = vld [vmem:[%s563_s19] sm:$0xf]  ;;  %s1707_s28 = sshll.u32 %s2392_s15, 2  ;;  %s2201_s30 = smov 100  }
 0x129   : > { %457 = vrot.lane.b32.xlu1 %v455_v28, %s2195_s27  ;;  %v515_v35 = vld [vmem:[%s514_s7] sm:$0xf]  ;;  %s1713_s27 = sshll.u32 %s2390_s1, 2  ;;  %s2202_s17 = smov 92  }
 0x12a   : > { %s2411_s16 = sld [smem:[#allocation5 + $0x1a]]  ;;  %s2413_s8 = sld [smem:[#allocation5 + $0x17]] }
 0x12b   : > { %s552_s9 = scalar_lea.vmem [#allocation2], %s1703_s12  ;;  %s541_s10 = scalar_lea.vmem [#allocation2], %s1701_s0 }
 0x12c   : > { %468 = vrot.lane.b32.xlu0 %v466_v31, %s2198_s26  ;;  %v553_v36 = vld [vmem:[%s552_s9] sm:$0xf]  ;;  %s1709_s26 = sshll.u32 %s2402_s14, 2  ;;  %s2203_s2 = smov 66  }
 0x12d   : > { %495 = vrot.lane.b32.xlu1 %v493_v30, %s2197_s25  ;;  %v542_v37 = vld [vmem:[%s541_s10] sm:$0xf]  ;;  %s1711_s25 = sshll.u32 %s2400_s13, 2  ;;  %s2204_s1 = smov 32  }
 0x12e   : > { %s2417_s15 = sld [smem:[#allocation5 + $0x19]]  ;;  %s2419_s18 = sld [smem:[#allocation5 + $0x18]] }
 0x12f   : > { %s2421_s11 = sld [smem:[#allocation5 + $0x1e]]  ;;  %s612_s23 = scalar_lea.vmem [#allocation2], %s1713_s27 }
 0x130   : > { %528 = vrot.lane.b32.xlu0 %v526_v33, %s2200_s6  ;;  %v613_v38 = vld [vmem:[%s612_s23] sm:$0xf]  ;;  %s579_s12 = scalar_lea.vmem [#allocation2], %s1707_s28  ;;  %s2205_s0 = smov 108  }
 0x131   : > { %506 = vrot.lane.b32.xlu1 %v504_v32, %s2199_s5  ;;  %v580_v39 = vld [vmem:[%s579_s12] sm:$0xf]  ;;  %s2206_s13 = smov 6   ;;  %s1721_s14 = sshll.u32 %s2411_s16, 2 }
 0x132   : > { %s2424_s19 = sld [smem:[#allocation5 + $0x1b]]  ;;  %s1715_s7 = sshll.u32 %s2413_s8, 2 }
 0x133   : > { %s2429_s9 = sld [smem:[#allocation5 + $0x1c]]  ;;  %s601_s10 = scalar_lea.vmem [#allocation2], %s1711_s25 }
 0x134   : > { %517 = vrot.lane.b32.xlu0 %v515_v35, %s2202_s17  ;;  %v602_v40 = vld [vmem:[%s601_s10] sm:$0xf]  ;;  %s590_s27 = scalar_lea.vmem [#allocation2], %s1709_s26  ;;  %s2207_s28 = smov 74  }
 0x135   : > { %566 = vrot.lane.b32.xlu1 %v564_v34, %s2201_s30  ;;  %s2427_s30 = sld [smem:[#allocation5 + $0x1d]]  ;;  %v591_v41 = vld [vmem:[%s590_s27] sm:$0xf]  ;;  %s1717_s23 = sshll.u32 %s2419_s18, 2 }
 0x136   : > { %s2433_s16 = sld [smem:[#allocation5 + $0x1f]]  ;;  %s2435_s8 = sld [smem:[#allocation5 + $0x21]] }
 0x137   : > { %s661_s12 = scalar_lea.vmem [#allocation2], %s1721_s14  ;;  %s1729_s25 = sshll.u32 %s2421_s11, 2 }
 0x138   : > { %544 = vrot.lane.b32.xlu0 %v542_v37, %s2204_s1  ;;  %s1719_s1 = sshll.u32 %s2417_s15, 2  ;;  %v662_v42 = vld [vmem:[%s661_s12] sm:$0xf]  ;;  %s2209_s26 = smov 116  }
 0x139   : > { %555 = vrot.lane.b32.xlu1 %v553_v36, %s2203_s2  ;;  %s2208_s2 = smov 40   ;;  %s1723_s10 = sshll.u32 %s2424_s19, 2 }
 0x13a   : > { %s650_s27 = scalar_lea.vmem [#allocation2], %s1719_s1  ;;  %s639_s15 = scalar_lea.vmem [#allocation2], %s1717_s23 }
 0x13b   : > { %v651_v44 = vld [vmem:[%s650_s27] sm:$0xf]  ;;  %s1727_s18 = sshll.u32 %s2427_s30, 2  ;;  %s1725_s14 = sshll.u32 %s2429_s9, 2 }
 0x13c   : > { %582 = vrot.lane.b32.xlu0 %v580_v39, %s2206_s13  ;;  %s2210_s13 = smov 14   ;;  %v640_v45 = vld [vmem:[%s639_s15] sm:$0xf]  ;;  %s710_s11 = scalar_lea.vmem [#allocation2], %s1729_s25 }
 0x13d   : > { %615 = vrot.lane.b32.xlu1 %v613_v38, %s2205_s0  ;;  %s628_s0 = scalar_lea.vmem [#allocation2], %s1715_s7  ;;  %s2441_s7 = sld [smem:[#allocation5 + $0x20]]  ;;  %v711_v47 = vld [vmem:[%s710_s11] sm:$0xf] }
 0x13e   : > { %v629_v43 = vld [vmem:[%s628_s0] sm:$0xf]  ;;  %s677_s19 = scalar_lea.vmem [#allocation2], %s1723_s10  ;;  %s2214_s30 = smov 124  }
 0x13f   : > { %v678_v48 = vld [vmem:[%s677_s19] sm:$0xf]  ;;  %s2215_s1 = smov 22   ;;  %s1731_s9 = sshll.u32 %s2433_s16, 2 }
 0x140   : > { %593 = vrot.lane.b32.xlu0 %v591_v41, %s2208_s2  ;;  %s2212_s2 = smov 48   ;;  %s1735_s23 = sshll.u32 %s2435_s8, 2 }
 0x141   : > { %604 = vrot.lane.b32.xlu1 %v602_v40, %s2207_s28  ;;  %s2211_s28 = smov 82   ;;  %s699_s12 = scalar_lea.vmem [#allocation2], %s1727_s18 }
 0x142   : > { %v700_v49 = vld [vmem:[%s699_s12] sm:$0xf]  ;;  %s688_s0 = scalar_lea.vmem [#allocation2], %s1725_s14  ;;  %s726_s25 = scalar_lea.vmem [#allocation2], %s1731_s9 }
 0x143   : > { %v689_v50 = vld [vmem:[%s688_s0] sm:$0xf]  ;;  %s1733_s27 = sshll.u32 %s2441_s7, 2  ;;  %s748_s10 = scalar_lea.vmem [#allocation2], %s1735_s23 }
 0x144   : > { %631 = vrot.lane.b32.xlu0 %v629_v43, %s2210_s13  ;;  %s2217_s13 = smov 56   ;;  %v727_v51 = vld [vmem:[%s726_s25] sm:$0xf]  ;;  %s2218_s15 = smov 30  }
 0x145   : > { %664 = vrot.lane.b32.xlu1 %v662_v42, %s2209_s26  ;;  %s2216_s26 = smov 90   ;;  %v749_v52 = vld [vmem:[%s748_s10] sm:$0xf]  ;;  %s2220_s16 = smov 64  }
 0x146   : > { %s2221_s8 = smov 93   ;;  %s2222_s18 = smov 60  }
 0x147   : > { %s2223_s14 = smov 127   ;;  %s2224_s7 = smov 94  }
 0x148   : > { %642 = vrot.lane.b32.xlu0 %v640_v45, %s2212_s2  ;;  %s737_s2 = scalar_lea.vmem [#allocation2], %s1733_s27  ;;  %s2225_s11 = smov 59  }
 0x149   : > { %653 = vrot.lane.b32.xlu1 %v651_v44, %s2211_s28  ;;  %s2219_s28 = smov 98   ;;  %v738_v53 = vld [vmem:[%s737_s2] sm:$0xf] }
 0x14c   : > { %680 = vrot.lane.b32.xlu0 %v678_v48, %s2215_s1  ;;  %s1842_s1 = smul.u32 1152, %s2176_s22 }
 0x14d   : > { %713 = vrot.lane.b32.xlu1 %v711_v47, %s2214_s30 }
 0x14e   : > { %s2887_s0 = scalar_lea.hbm %s2938_s4, %s1842_s1 }
 0x150   : > { %691 = vrot.lane.b32.xlu0 %v689_v50, %s2217_s13  ;;  %s2228_s13 = smov [#allocation6]  }
 0x151   : > { %702 = vrot.lane.b32.xlu1 %v700_v49, %s2216_s26  ;;  %s2108_s27 = sshll.u32 %s2228_s13, 4  ;;  %s2109_s27 = int_to_ptr.vmem [resolvable:$false] %s2108_s27 }
 0x152   : > { %s2110_s25 = scalar_lea.vmem %s2109_s27, 2304 }
 0x154   : > { %751 = vrot.lane.b32.xlu0 %v749_v52, %s2219_s28 }
 0x155   : > { %729 = vrot.lane.b32.xlu1 %v727_v51, %s2218_s15 }
 0x158   : > { %740 = vrot.lane.b32.xlu0 %v738_v53, %s2220_s16 }
 0x18a   : > { %v382_v54 = vpop.permute.xlu0 %381 }
 0x18b   : > { %v371_v55 = vpop.permute.xlu1 %370  ;;  %v383_v56 = vrot.slane %v382_v54, 4 }
 0x18d   : > { %v385_v59 = vsel %vm384_vm7, %v383_v56, %v382_v54  ;;  %vm487_vm7 = vmor %vm486_vm4, %vm485_vm3  ;;  %vm558_vm3 = vcmask 814608  }
 0x18e   : > { %v360_v58 = vpop.permute.xlu0 %359 }
 0x18f   : > { %v398_v57 = vpop.permute.xlu1 %397  ;;  %363 = vst.msk [vmem:[#allocation3] sm:$0xf] %vm362_vm6, %v360_v58  ;;  %vm471_vm6 = vcmask 962208  }
 0x190   : > { %374 = vst.msk [vmem:[#allocation3] sm:$0xf] %vm373_vm8, %v371_v55  ;;  %vm498_vm8 = vcmask 470208  }
 0x191   : > { %390 = vst.msk [vmem:[#allocation3] sm:$0xff] %vm389_vm9, %v385_v59  ;;  %vm509_vm9 = vcmask 749008  }
 0x192   : > { %401 = vst.msk [vmem:[#allocation3 + $0x4] sm:$0xf] %vm400_vm10, %v398_v57  ;;  %v431_v61 = vpop.permute.xlu0 %430  ;;  %vm534_vm10 = vcmask 1044464  }
 0x193   : > { %v409_v60 = vpop.permute.xlu1 %408  ;;  %v432_v62 = vrot.slane %v431_v61, 4 }
 0x194   : > { %412 = vst.msk [vmem:[#allocation3 + $0x4] sm:$0xf] %vm411_vm11, %v409_v60  ;;  %vm535_vm11 = vcmask 261124  }
 0x195   : > { %v434_v1 = vsel %vm433_vm14, %v432_v62, %v431_v61  ;;  %vm536_vm14 = vmor %vm535_vm11, %vm534_vm10  ;;  %vm607_vm10 = vcmask 880208  }
 0x196   : > { %v420_v0 = vpop.permute.xlu0 %419 }
 0x197   : > { %v447_v63 = vpop.permute.xlu1 %446  ;;  %423 = vst.msk [vmem:[#allocation3 + $0x4] sm:$0xf] %vm422_vm15, %v420_v0  ;;  %vm572_vm15 = vcmask 1044256  }
 0x198   : > { %439 = vst.msk [vmem:[#allocation3 + $0x4] sm:$0xff] %vm438_vm0, %v434_v1  ;;  %vm573_vm0 = vcmask 48132  }
 0x199   : > { %450 = vst.msk [vmem:[#allocation3 + $0x8] sm:$0xf] %vm449_vm1, %v447_v63  ;;  %vm547_vm1 = vcmask 535808   ;;  %vm574_vm4 = vmor %vm573_vm0, %vm572_vm15  ;;  %vm671_vm15 = vcmask 179204   ;;  %vm645_vm0 = vcmask 667008  }
 0x19a   : > { %v480_v3 = vpop.permute.xlu0 %479 }
 0x19b   : > { %v458_v2 = vpop.permute.xlu1 %457  ;;  %v481_v4 = vrot.slane %v480_v3, 4 }
 0x19c   : > { %461 = vst.msk [vmem:[#allocation3 + $0x8] sm:$0xf] %vm460_vm2, %v458_v2  ;;  %vm569_vm2 = vcmask 818176  }
 0x19d   : > { %v483_v7 = vsel %vm482_vm5, %v481_v4, %v480_v3  ;;  %vm585_vm5 = vcmask 322608  }
 0x19e   : > { %v469_v6 = vpop.permute.xlu0 %468 }
 0x19f   : > { %v496_v5 = vpop.permute.xlu1 %495  ;;  %472 = vst.msk [vmem:[#allocation3 + $0x8] sm:$0xf] %vm471_vm6, %v469_v6  ;;  %v2449_v8 = vld [vmem:[#allocation3] sm:$0xff]  ;;  %vm621_vm6 = vcmask 1044320  }
 0x1a0   : > { %488 = vst.msk [vmem:[#allocation3 + $0x8] sm:$0xff] %vm487_vm7, %v483_v7  ;;  %1045 = vrot.lane.b32.xlu1 %v2449_v8, %s2199_s5  ;;  %v2455_v11 = vcombine.high %v2449_v8, %v2449_v8  ;;  %vm622_vm7 = vcmask 113668   ;;  %v780_v27 = vcombine.low %v2449_v8, %v2449_v8 }
 0x1a1   : > { %499 = vst.msk [vmem:[#allocation3 + $0xc] sm:$0xf] %vm498_vm8, %v496_v5  ;;  %vm596_vm8 = vcmask 601408   ;;  %vm623_vm11 = vmor %vm622_vm7, %vm621_vm6  ;;  %vm720_vm6 = vcmask 244740   ;;  %vm694_vm7 = vcmask 732608  }
 0x1a2   : > { %v529_v10 = vpop.permute.xlu0 %528 }
 0x1a3   : > { %v507_v9 = vpop.permute.xlu1 %506  ;;  %v530_v12 = vrot.slane %v529_v10, 4 }
 0x1a4   : > { %510 = vst.msk [vmem:[#allocation3 + $0xc] sm:$0xf] %vm509_vm9, %v507_v9  ;;  %1047 = vrot.lane.b32.xlu1 %v2455_v11, %s2199_s5  ;;  %vm618_vm9 = vcmask 883712  }
 0x1a5   : > { %v532_v15 = vsel %vm531_vm12, %v530_v12, %v529_v10 }
 0x1a6   : > { %v518_v14 = vpop.permute.xlu0 %517 }
 0x1a7   : > { %v567_v13 = vpop.permute.xlu1 %566  ;;  %521 = vst.msk [vmem:[#allocation3 + $0xc] sm:$0xf] %vm520_vm13, %v518_v14  ;;  %vm634_vm13 = vcmask 388208  }
 0x1a8   : > { %v568_v16 = vrot.slane %v567_v13, 4  ;;  %537 = vst.msk [vmem:[#allocation3 + $0xc] sm:$0xff] %vm536_vm14, %v532_v15  ;;  %vm670_vm14 = vcmask 1044384  }
 0x1aa   : > { %v545_v18 = vpop.permute.xlu0 %544  ;;  %v570_v19 = vsel %vm569_vm2, %v568_v16, %v567_v13  ;;  %vm656_vm2 = vcmask 945808  }
 0x1ab   : > { %v556_v17 = vpop.permute.xlu1 %555  ;;  %548 = vst.msk [vmem:[#allocation3 + $0x10] sm:$0xf] %vm547_vm1, %v545_v18  ;;  %vm667_vm1 = vcmask 949248  }
 0x1ac   : > { %559 = vst.msk [vmem:[#allocation3 + $0x10] sm:$0xf] %vm558_vm3, %v556_v17  ;;  %vm672_vm3 = vmor %vm671_vm15, %vm670_vm14  ;;  %vm758_vm14 = vcmask 31748   ;;  %vm754_vm15 = vcmask 801792  }
 0x1ad   : > { %575 = vst.msk [vmem:[#allocation3 + $0x10] sm:$0xff] %vm574_vm4, %v570_v19  ;;  %vm683_vm4 = vcmask 453808  }
 0x1ae   : > { %v583_v21 = vpop.permute.xlu0 %582 }
 0x1af   : > { %v616_v20 = vpop.permute.xlu1 %615  ;;  %586 = vst.msk [vmem:[#allocation3 + $0x14] sm:$0xf] %vm585_vm5, %v583_v21  ;;  %v2460_v22 = vld [vmem:[#allocation3 + $0x8] sm:$0xff]  ;;  %vm719_vm5 = vcmask 1044448  }
 0x1b0   : > { %v617_v23 = vrot.slane %v616_v20, 4  ;;  %v1955_v24 = vpack.i.bf16 %v2460_v22, %v2455_v11  ;;  %v1945_v29 = vpack.i.bf16 %v2460_v22, %v780_v27  ;;  %v781_v30 = vcombine.low %v2460_v22, %v2460_v22 }
 0x1b1   : > { %v2478_v38 = vcombine.high %v2460_v22, %v2460_v22 }
 0x1b2   : > { %v594_v26 = vpop.permute.xlu0 %593  ;;  %1956 = vrot.lane.b32.xlu1 %v1955_v24, %s2221_s8  ;;  %1941 = vrot.lane.b32.xlu0 %v1955_v24, %s2200_s6  ;;  %v619_v28 = vsel %vm618_vm9, %v617_v23, %v616_v20  ;;  %v1975_v34 = vpack.i.bf16 %v781_v30, %v2449_v8  ;;  %vm705_vm9 = vcmask 1011408  }
 0x1b3   : > { %v605_v25 = vpop.permute.xlu1 %604  ;;  %597 = vst.msk [vmem:[#allocation3 + $0x14] sm:$0xf] %vm596_vm8, %v594_v26  ;;  %v1985_v42 = vpack.i.bf16 %v2478_v38, %v2449_v8  ;;  %vm716_vm8 = vcmask 1014784  }
 0x1b4   : > { %608 = vst.msk [vmem:[#allocation3 + $0x14] sm:$0xf] %vm607_vm10, %v605_v25  ;;  %vm721_vm10 = vmor %vm720_vm6, %vm719_vm5  ;;  %vm946_vm5 = vcmask 752640   ;;  %vm910_vm6 = vcmask 760832  }
 0x1b5   : > { %624 = vst.msk [vmem:[#allocation3 + $0x14] sm:$0xff] %vm623_vm11, %v619_v28  ;;  %vm732_vm11 = vcmask 519408  }
 0x1b6   : > { %v632_v32 = vpop.permute.xlu0 %631  ;;  %1961 = vrot.lane.b32.xlu1 %v1955_v24, %s2222_s18  ;;  %1946 = vrot.lane.b32.xlu0 %v1945_v29, %s2223_s14 }
 0x1b7   : > { %v665_v31 = vpop.permute.xlu1 %664  ;;  %635 = vst.msk [vmem:[#allocation3 + $0x18] sm:$0xf] %vm634_vm13, %v632_v32  ;;  %vm757_vm13 = vcmask 1044240  }
 0x1b8   : > { %v666_v33 = vrot.slane %v665_v31, 4 }
 0x1ba   : > { %v643_v36 = vpop.permute.xlu0 %642  ;;  %1951 = vrot.lane.b32.xlu0 %v1945_v29, %s2224_s7  ;;  %1976 = vrot.lane.b32.xlu1 %v1975_v34, %s2223_s14  ;;  %v668_v37 = vsel %vm667_vm1, %v666_v33, %v665_v31  ;;  %vm759_vm1 = vmor %vm758_vm14, %vm757_vm13 }
 0x1bb   : > { %v654_v35 = vpop.permute.xlu1 %653  ;;  %646 = vst.msk [vmem:[#allocation3 + $0x18] sm:$0xf] %vm645_vm0, %v643_v36  ;;  %vm743_vm0 = vcmask 798208  }
 0x1bc   : > { %657 = vst.msk [vmem:[#allocation3 + $0x18] sm:$0xf] %vm656_vm2, %v654_v35  ;;  %v2489_v50 = vld [vmem:[#allocation3 + $0x10] sm:$0xff]  ;;  %vm803_vm2 = vcmask 1039360  }
 0x1bd   : > { %673 = vst.msk [vmem:[#allocation3 + $0x18] sm:$0xff] %vm672_vm3, %v668_v37  ;;  %v782_v53 = vcombine.low %v2489_v50, %v2489_v50  ;;  %v2501_v55 = vcombine.high %v2489_v50, %v2489_v50  ;;  %vm874_vm3 = vcmask 769024  }
 0x1be   : > { %v681_v40 = vpop.permute.xlu0 %680  ;;  %1966 = vrot.lane.b32.xlu0 %v1945_v29, %s2202_s17  ;;  %1981 = vrot.lane.b32.xlu1 %v1975_v34, %s2224_s7 }
 0x1bf   : > { %v714_v39 = vpop.permute.xlu1 %713  ;;  %684 = vst.msk [vmem:[#allocation3 + $0x1c] sm:$0xf] %vm683_vm4, %v681_v40  ;;  %v2010_v54 = vpack.i.bf16 %v2489_v50, %v782_v53  ;;  %v2015_v56 = vpack.i.bf16 %v2501_v55, %v2489_v50  ;;  %vm1075_vm4 = vcmask 1043456  }
 0x1c0   : > { %v715_v41 = vrot.slane %v714_v39, 4 }
 0x1c2   : > { %v692_v44 = vpop.permute.xlu0 %691  ;;  %1971 = vrot.lane.b32.xlu0 %v1945_v29, %s2225_s11  ;;  %1986 = vrot.lane.b32.xlu1 %v1985_v42, %s2200_s6  ;;  %v717_v45 = vsel %vm716_vm8, %v715_v41, %v714_v39  ;;  %vm1026_vm8 = vcmask 482304  }
 0x1c3   : > { %v703_v43 = vpop.permute.xlu1 %702  ;;  %695 = vst.msk [vmem:[#allocation3 + $0x1c] sm:$0xf] %vm694_vm7, %v692_v44  ;;  %vm986_vm7 = vcmask 490496  }
 0x1c4   : > { %706 = vst.msk [vmem:[#allocation3 + $0x1c] sm:$0xf] %vm705_vm9, %v703_v43  ;;  %vm1065_vm9 = vcmask 474112  }
 0x1c5   : > { %722 = vst.msk [vmem:[#allocation3 + $0x1c] sm:$0xff] %vm721_vm10, %v717_v45  ;;  %vm1113_vm10 = vcmask 293888  }
 0x1c6   : > { %v752_v48 = vpop.permute.xlu0 %751  ;;  %1049 = vrot.lane.b32.xlu0 %v2460_v22, %s2199_s5  ;;  %2001 = vrot.lane.b32.xlu1 %v1985_v42, %s2221_s8 }
 0x1c7   : > { %v730_v47 = vpop.permute.xlu1 %729  ;;  %v753_v49 = vrot.slane %v752_v48, 4 }
 0x1c8   : > { %733 = vst.msk [vmem:[#allocation3 + $0x20] sm:$0xf] %vm732_vm11, %v730_v47  ;;  %vm1497_vm11 = vcmask 523264  }
 0x1c9   : > { %v755_v52 = vsel %vm754_vm15, %v753_v49, %v752_v48 }
 0x1ca   : > { %v741_v51 = vpop.permute.xlu0 %740  ;;  %1991 = vrot.lane.b32.xlu0 %v1975_v34, %s2202_s17  ;;  %2006 = vrot.lane.b32.xlu1 %v1985_v42, %s2222_s18 }
 0x1cb   : > { %744 = vst.msk [vmem:[#allocation3 + $0x20] sm:$0xf] %vm743_vm0, %v741_v51 }
 0x1cc   : > { %760 = vst.msk [vmem:[#allocation3 + $0x20] sm:$0xff] %vm759_vm1, %v755_v52  ;;  %v2512_v57 = vld [vmem:[#allocation3 + $0x18] sm:$0xff] }
 0x1cd   : > { %v783_v58 = vcombine.low %v2512_v57, %v2512_v57  ;;  %v2520_v59 = vcombine.high %v2512_v57, %v2512_v57 }
 0x1ce   : > { %1996 = vrot.lane.b32.xlu0 %v1975_v34, %s2225_s11  ;;  %1051 = vrot.lane.b32.xlu1 %v2478_v38, %s2199_s5 }
 0x1cf   : > { %v2045_v60 = vpack.i.bf16 %v2512_v57, %v783_v58  ;;  %v2050_v61 = vpack.i.bf16 %v2520_v59, %v2512_v57 }
 0x1d2   : > { %1053 = vrot.lane.b32.xlu0 %v2489_v50, %s2199_s5  ;;  %2011 = vrot.lane.b32.xlu1 %v2010_v54, %s2223_s14 }
 0x1d3   : > { %v2535_v62 = vld [vmem:[#allocation3 + $0x20] sm:$0xf] }
 0x1d4   : > { %v766_v63 = vld [vmem:[#allocation3 + $0x20] sm:$0xff]  ;;  %v784_v0 = vcombine.low %v2535_v62, %v2535_v62 }
 0x1d5   : > { %v965_v1 = vcombine.high %v766_v63, %v766_v63  ;;  %v1005_v3 = vcombine.low %v766_v63, %v766_v63 }
 0x1d6   : > { %2021 = vrot.lane.b32.xlu1 %v2010_v54, %s2224_s7  ;;  %2016 = vrot.lane.b32.xlu0 %v2015_v56, %s2200_s6 }
 0x1d7   : > { %v2075_v2 = vpack.i.bf16 %v965_v1, %v766_v63  ;;  %v2080_v4 = vpack.i.bf16 %v1005_v3, %v2512_v57 }
 0x1da   : > { %2031 = vrot.lane.b32.xlu1 %v2010_v54, %s2202_s17  ;;  %2026 = vrot.lane.b32.xlu0 %v2015_v56, %s2221_s8 }
 0x1de   : > { %2041 = vrot.lane.b32.xlu1 %v2010_v54, %s2225_s11  ;;  %2036 = vrot.lane.b32.xlu0 %v2015_v56, %s2222_s18 }
 0x1e2   : > { %1055 = vrot.lane.b32.xlu1 %v2501_v55, %s2199_s5  ;;  %1057 = vrot.lane.b32.xlu0 %v2512_v57, %s2199_s5 }
 0x1e6   : > { %2046 = vrot.lane.b32.xlu0 %v2045_v60, %s2223_s14  ;;  %2051 = vrot.lane.b32.xlu1 %v2050_v61, %s2200_s6 }
 0x1ea   : > { %2056 = vrot.lane.b32.xlu0 %v2045_v60, %s2224_s7  ;;  %2066 = vrot.lane.b32.xlu1 %v2045_v60, %s2202_s17 }
 0x1ee   : > { %2061 = vrot.lane.b32.xlu0 %v2050_v61, %s2221_s8  ;;  %1018 = vrot.lane.b32.xlu1 %v783_v58, %s2225_s11 }
 0x1f2   : > { %2071 = vrot.lane.b32.xlu0 %v2050_v61, %s2222_s18  ;;  %837 = vrot.lane.b32.xlu1 %v2535_v62, %s2200_s6 }
 0x1f6   : > { %908 = vrot.lane.b32.xlu1 %v2535_v62, %s2221_s8  ;;  %801 = vrot.lane.b32.xlu0 %v784_v0, %s2223_s14 }
 0x1fa   : > { %2076 = vrot.lane.b32.xlu1 %v2075_v2, %s2222_s18  ;;  %872 = vrot.lane.b32.xlu0 %v784_v0, %s2224_s7 }
 0x1fe   : > { %1024 = vrot.lane.b32.xlu1 %v766_v63, %s2225_s11  ;;  %944 = vrot.lane.b32.xlu0 %v784_v0, %s2202_s17  ;;  %s182_s17 = sand.u32 1, %s2168_s21  }
 0x1ff   : > { %s1841_s19 = smul.u32 72, %s182_s17  ;;  %s1500_s22 = scalar_lea.sflag [#allocation7], %s182_s17 }
 0x201   : > { %s184_s30 = scalar_lea.vmem [#allocation6], %s1841_s19 }
 0x202   : > { %1061 = vrot.lane.b32.xlu1 %v766_v63, %s2199_s5  ;;  %2081 = vrot.lane.b32.xlu0 %v2080_v4, %s2225_s11  ;;  %s1516_s9 = sshll.u32 %s184_s30, 4  ;;  %s2889_s9 = int_to_ptr.vmem [resolvable:$true] %s1516_s9 }
 0x203   : > { %s2104_s26 = scalar_lea.vmem %s2889_s9, 1152  ;;  %p2111_p6 = scmp.lt.s32.totalorder %s2889_s9, %s2109_s27 }
 0x204   : > { %p2105_p3 = scmp.ne.s32.totalorder %s2889_s9, %s2104_s26  ;;  %p2112_p7 = scmp.lt.s32.totalorder %s2110_s25, %s2104_s26 }
 0x206   : > { %1059 = vrot.lane.b32.xlu0 %v2520_v59, %s2199_s5  ;;  %p2106_p4 = pnand %p2105_p3, %p2297_p9  ;;  %p2113_p8 = por %p2112_p7, %p2111_p6 }
 0x208   : > { %p2107_p5 = pneg %p2106_p4 }
 0x20a   : > { %1063 = vrot.lane.b32.xlu0 %v965_v1, %s2199_s5  ;;  %p2114_p10 = pnand %p2113_p8, %p2107_p5 }
 0x212   : > { %v2555_v5 = vpop.permute.xlu1 %1045 }
 0x216   : > { %v2557_v6 = vpop.permute.xlu1 %1047 }
 0x224   : > { %v2559_v7 = vpop.permute.xlu1 %1956  ;;  %v2561_v9 = vpop.permute.xlu0 %1941 }
 0x225   : > { %v1944_v17 = vunpack.i.h.bf16 %v2561_v9  ;;  %v1943_v18 = vunpack.i.l.bf16 %v2561_v9  ;;  %v1959_v48 = vunpack.i.h.bf16 %v2559_v7  ;;  %v1958_v49 = vunpack.i.l.bf16 %v2559_v7  ;;  %v2674_v9 = vld [vmem:[%s2937_s3] sm:$0xff] }
 0x227   : > { %v840_v26 = vsel %vm531_vm12, %v1943_v18, %v1944_v17  ;;  %v912_v1 = vsel %vm910_vm6, %v1958_v49, %v1959_v48 }
 0x228   : > { %v2563_v10 = vpop.permute.xlu1 %1961  ;;  %v2565_v12 = vpop.permute.xlu0 %1946 }
 0x229   : > { %v1948_v25 = vunpack.i.l.bf16 %v2565_v12  ;;  %v1963_v51 = vunpack.i.l.bf16 %v2563_v10 }
 0x22c   : > { %v2567_v13 = vpop.permute.xlu0 %1951  ;;  %v2569_v14 = vpop.permute.xlu1 %1976 }
 0x22d   : > { %v1979_v15 = vunpack.i.h.bf16 %v2569_v14  ;;  %v1978_v16 = vunpack.i.l.bf16 %v2569_v14  ;;  %v1953_v31 = vunpack.i.l.bf16 %v2567_v13 }
 0x22f   : > { %v805_v24 = vsel %vm803_vm2, %v1978_v16, %v1979_v15  ;;  %v804_v34 = vsel %vm803_vm2, %v1948_v25, %v1978_v16 }
 0x230   : > { %v2575_v19 = vpop.permute.xlu0 %1966  ;;  %v2577_v20 = vpop.permute.xlu1 %1981  ;;  %v1077_v33 = vsel %vm1075_vm4, %v2455_v11, %v805_v24  ;;  %v1076_v41 = vsel %vm1075_vm4, %v2449_v8, %v804_v34  ;;  %v1964_v8 = vunpack.i.h.bf16 %v2563_v10 }
 0x231   : > { %v1984_v21 = vunpack.i.h.bf16 %v2577_v20  ;;  %v1983_v23 = vunpack.i.l.bf16 %v2577_v20  ;;  %v1968_v53 = vunpack.i.l.bf16 %v2575_v19 }
 0x232   : > { %v988_v3 = vsel %vm986_vm7, %v1963_v51, %v1964_v8 }
 0x233   : > { %v876_v27 = vsel %vm874_vm3, %v1983_v23, %v1984_v21  ;;  %v875_v37 = vsel %vm874_vm3, %v1953_v31, %v1983_v23 }
 0x234   : > { %v2591_v28 = vpop.permute.xlu0 %1971  ;;  %v2593_v29 = vpop.permute.xlu1 %1986  ;;  %v1086_v30 = vsel %vm1075_vm4, %v840_v26, %v876_v27 }
 0x235   : > { %v1988_v32 = vunpack.i.l.bf16 %v2593_v29  ;;  %v1803_v35 = vpack.c.bf16 %v1086_v30, %v1077_v33  ;;  %v1973_v60 = vunpack.i.l.bf16 %v2591_v28  ;;  %v1989_v31 = vunpack.i.h.bf16 %v2593_v29 }
 0x236   : > { %v1954_v29 = vunpack.i.h.bf16 %v2567_v13 }
 0x237   : > { %v839_v36 = vsel %vm531_vm12, %v1988_v32, %v1943_v18  ;;  %1804 = vmatprep.subr.bf16.mxu1 %v1803_v35 }
 0x238   : > { %v2603_v39 = vpop.permute.xlu0 %1049  ;;  %v2605_v40 = vpop.permute.xlu1 %2001  ;;  %v1085_v42 = vsel %vm1075_vm4, %v839_v36, %v875_v37  ;;  %v1949_v36 = vunpack.i.h.bf16 %v2565_v12  ;;  %v1066_v12 = vsel %vm1065_vm9, %v2555_v5, %v2557_v6 }
 0x239   : > { %v1805_v43 = vpack.c.bf16 %v1085_v42, %v1076_v41  ;;  %v2003_v54 = vunpack.i.l.bf16 %v2605_v40  ;;  %v1067_v37 = vsel %vm1065_vm9, %v2557_v6, %v2603_v39 }
 0x23a   : > { %v806_v13 = vsel %vm803_vm2, %v1979_v15, %v1949_v36 }
 0x23b   : > { %1806 = vmatpush1.bf16.msra.mxu1 %v1805_v43  ;;  %v911_v23 = vsel %vm910_vm6, %v2003_v54, %v1958_v49  ;;  %v841_v43 = vsel %vm531_vm12, %v1944_v17, %v1989_v31  ;;  %v877_v17 = vsel %vm874_vm3, %v1984_v21, %v1954_v29 }
 0x23c   : > { %v2610_v11 = vpop.permute.xlu0 %1991  ;;  %v2612_v44 = vpop.permute.xlu1 %2006  ;;  %v1087_v15 = vsel %vm1075_vm4, %v841_v43, %v877_v17 }
 0x23d   : > { %v1994_v45 = vunpack.i.h.bf16 %v2610_v11  ;;  %v1993_v47 = vunpack.i.l.bf16 %v2610_v11  ;;  %v2008_v52 = vunpack.i.l.bf16 %v2612_v44 }
 0x23f   : > { %v948_v61 = vsel %vm946_vm5, %v1993_v47, %v1994_v45  ;;  %v947_v2 = vsel %vm946_vm5, %v1968_v53, %v1993_v47  ;;  %v987_v4 = vsel %vm986_vm7, %v2008_v52, %v1963_v51 }
 0x240   : > { %v1997_v56 = vpop.permute.xlu0 %1996  ;;  %v2623_v58 = vpop.permute.xlu1 %1051  ;;  %v1095_v26 = vsel %vm1075_vm4, %v912_v1, %v948_v61  ;;  %v1094_v33 = vsel %vm1075_vm4, %v911_v23, %v947_v2  ;;  %v1969_v1 = vunpack.i.h.bf16 %v2575_v19  ;;  %v2004_v2 = vunpack.i.h.bf16 %v2605_v40 }
 0x241   : > { %v1999_v63 = vunpack.i.h.bf16 %v1997_v56  ;;  %v1998_v0 = vunpack.i.l.bf16 %v1997_v56  ;;  %v1974_v56 = vunpack.i.h.bf16 %v2591_v28  ;;  %v1068_v43 = vsel %vm1065_vm9, %v2603_v39, %v2623_v58 }
 0x243   : > { %v1027_v16 = vsel %vm1026_vm8, %v1973_v60, %v1998_v0  ;;  %v1028_v18 = vsel %vm1026_vm8, %v1998_v0, %v1999_v63  ;;  %v2009_v60 = vunpack.i.h.bf16 %v2612_v44  ;;  %v1078_v0 = vsel %vm1075_vm4, %v2460_v22, %v806_v13 }
 0x244   : > { %v2640_v24 = vpop.permute.xlu0 %1053  ;;  %v2642_v25 = vpop.permute.xlu1 %2011  ;;  %v1104_v27 = vsel %vm1075_vm4, %v988_v3, %v1028_v18  ;;  %v1103_v30 = vsel %vm1075_vm4, %v987_v4, %v1027_v16  ;;  %v1813_v3 = vpack.c.bf16 %v1087_v15, %v1078_v0  ;;  %v949_v44 = vsel %vm946_vm5, %v1994_v45, %v1969_v1 }
 0x245   : > { %v1807_v32 = vpack.c.bf16 %v1104_v27, %v1095_v26  ;;  %v2013_v34 = vunpack.i.l.bf16 %v2642_v25  ;;  %v1809_v35 = vpack.c.bf16 %v1103_v30, %v1094_v33  ;;  %v913_v27 = vsel %vm910_vm6, %v1959_v48, %v2004_v2 }
 0x246   : > { %v1069_v33 = vsel %vm1065_vm9, %v2623_v58, %v2640_v24 }
 0x247   : > { %1808 = vmatprep.subr.bf16.mxu1 %v1807_v32  ;;  %v807_v51 = vsel %vm803_vm2, %v1949_v36, %v2013_v34 }
 0x248   : > { %1810 = vmatpush1.bf16.msra.mxu1 %v1809_v35  ;;  %v2654_v41 = vpop.permute.xlu1 %2021  ;;  %v2656_v42 = vpop.permute.xlu0 %2016  ;;  %v1079_v54 = vsel %vm1075_vm4, %v2478_v38, %v807_v51  ;;  %v1029_v38 = vsel %vm1026_vm8, %v1999_v63, %v1974_v56  ;;  %v989_v63 = vsel %vm986_vm7, %v1964_v8, %v2009_v60  ;;  %v1096_v8 = vsel %vm1075_vm4, %v913_v27, %v949_v44 }
 0x249   : > { %v2023_v47 = vunpack.i.l.bf16 %v2654_v41  ;;  %v2018_v49 = vunpack.i.l.bf16 %v2656_v42  ;;  %1736 = vmatprep.subr.msk.mxu1 %vm1075_vm4, %v1067_v37  ;;  %v1105_v26 = vsel %vm1075_vm4, %v989_v63, %v1029_v38  ;;  %v2024_v7 = vunpack.i.h.bf16 %v2654_v41 }
 0x24a   : > { %v1817_v32 = vpack.c.bf16 %v1105_v26, %v1096_v8  ;;  %v2019_v48 = vunpack.i.h.bf16 %v2656_v42 }
 0x24b   : > { %v878_v5 = vsel %vm874_vm3, %v1954_v29, %v2023_v47  ;;  %v842_v6 = vsel %vm531_vm12, %v1989_v31, %v2018_v49  ;;  %v2014_v29 = vunpack.i.h.bf16 %v2642_v25  ;;  %v879_v51 = vsel %vm874_vm3, %v2023_v47, %v2024_v7 }
 0x24c   : > { %1737 = vmatpush1.msk.msra.mxu1 %vm1075_vm4, %v1066_v12  ;;  %v2689_v52 = vpop.permute.xlu1 %2031  ;;  %v2691_v53 = vpop.permute.xlu0 %2026  ;;  %v1088_v14 = vsel %vm1075_vm4, %v842_v6, %v878_v5  ;;  %v843_v13 = vsel %vm531_vm12, %v2018_v49, %v2019_v48 }
 0x24d   : > { %v2033_v20 = vunpack.i.l.bf16 %v2689_v52  ;;  %v2028_v21 = vunpack.i.l.bf16 %v2691_v53  ;;  %1738 = vmatmul.mubr.msk.f32.vlgmr.msra.gmra.mrb[0].mxu1 %vm1113_vm10, %v2674_v9  ;;  %v1811_v61 = vpack.c.bf16 %v1088_v14, %v1079_v54  ;;  %v808_v39 = vsel %vm803_vm2, %v2013_v34, %v2014_v29 }
 0x24e   : > { %1341 = vmatprep.mubr.f32.mxu1 %v2213_v46  ;;  %v1089_v42 = vsel %vm1075_vm4, %v843_v13, %v879_v51  ;;  %v2034_v0 = vunpack.i.h.bf16 %v2689_v52 }
 0x24f   : > { %1812 = vmatprep.subr.bf16.mxu0 %v1811_v61  ;;  %v950_v28 = vsel %vm946_vm5, %v1969_v1, %v2033_v20  ;;  %v914_v22 = vsel %vm910_vm6, %v2004_v2, %v2028_v21  ;;  %v1080_v61 = vsel %vm1075_vm4, %v2489_v50, %v808_v39  ;;  %v2029_v1 = vunpack.i.h.bf16 %v2691_v53 }
 0x250   : > { %v2709_v4 = vpop.permute.xlu1 %2041  ;;  %v2711_v16 = vpop.permute.xlu0 %2036  ;;  %1814 = vmatpush1.bf16.msra.mxu0 %v1813_v3  ;;  %v1097_v11 = vsel %vm1075_vm4, %v914_v22, %v950_v28  ;;  %v1821_v2 = vpack.c.bf16 %v1089_v42, %v1080_v61  ;;  %v951_v22 = vsel %vm946_vm5, %v2033_v20, %v2034_v0 }
 0x251   : > { %v2043_v19 = vunpack.i.l.bf16 %v2709_v4  ;;  %v2038_v40 = vunpack.i.l.bf16 %v2711_v16  ;;  %v2044_v47 = vunpack.i.h.bf16 %v2709_v4  ;;  %v2039_v49 = vunpack.i.h.bf16 %v2711_v16 }
 0x253   : > { %v1030_v18 = vsel %vm1026_vm8, %v1974_v56, %v2043_v19  ;;  %v990_v23 = vsel %vm986_vm7, %v2009_v60, %v2038_v40  ;;  %v1031_v38 = vsel %vm1026_vm8, %v2043_v19, %v2044_v47  ;;  %v915_v19 = vsel %vm910_vm6, %v2028_v21, %v2029_v1 }
 0x254   : > { %v2733_v30 = vpop.permute.xlu1 %1055  ;;  %v2735_v31 = vpop.permute.xlu0 %1057  ;;  %v1106_v10 = vsel %vm1075_vm4, %v990_v23, %v1030_v18 }
 0x255   : > { %v1815_v45 = vpack.c.bf16 %v1106_v10, %v1097_v11  ;;  %v1098_v10 = vsel %vm1075_vm4, %v915_v19, %v951_v22 }
 0x257   : > { %1816 = vmatprep.subr.bf16.mxu0 %v1815_v45 }
 0x258   : > { %1818 = vmatpush1.bf16.msra.mxu0 %v1817_v32  ;;  %v2745_v35 = vpop.permute.xlu0 %2046  ;;  %v2747_v36 = vpop.permute.xlu1 %2051 }
 0x259   : > { %v2048_v37 = vunpack.i.l.bf16 %v2745_v35  ;;  %1739 = vmatprep.subr.msk.mxu0 %vm1075_vm4, %v1069_v33  ;;  %v2053_v12 = vunpack.i.l.bf16 %v2747_v36  ;;  %v2049_v20 = vunpack.i.h.bf16 %v2745_v35  ;;  %v2054_v53 = vunpack.i.h.bf16 %v2747_v36 }
 0x25a   : > { %v1071_v33 = vsel %vm1065_vm9, %v2733_v30, %v2735_v31 }
 0x25b   : > { %v809_v6 = vsel %vm803_vm2, %v2014_v29, %v2048_v37  ;;  %v844_v58 = vsel %vm531_vm12, %v2019_v48, %v2053_v12  ;;  %v845_v48 = vsel %vm531_vm12, %v2053_v12, %v2054_v53 }
 0x25c   : > { %1740 = vmatpush1.msk.msra.mxu0 %vm1075_vm4, %v1068_v43  ;;  %v2057_v17 = vpop.permute.xlu0 %2056  ;;  %v2763_v5 = vpop.permute.xlu1 %2066  ;;  %v1081_v25 = vsel %vm1075_vm4, %v2501_v55, %v809_v6  ;;  %v991_v55 = vsel %vm986_vm7, %v2038_v40, %v2039_v49 }
 0x25d   : > { %v2058_v14 = vunpack.i.l.bf16 %v2057_v17  ;;  %1741 = vmatmul.mubr.msk.f32.vlgmr.msra.gmra.mrb[8].mxu0 %vm1113_vm10, %v2674_v9  ;;  %v2068_v3 = vunpack.i.l.bf16 %v2763_v5  ;;  %v2059_v44 = vunpack.i.h.bf16 %v2057_v17  ;;  %v1107_v52 = vsel %vm1075_vm4, %v991_v55, %v1031_v38 }
 0x25e   : > { %1412 = vmatprep.mubr.f32.mxu0 %v2213_v46  ;;  %v1825_v8 = vpack.c.bf16 %v1107_v52, %v1098_v10  ;;  %v2069_v39 = vunpack.i.h.bf16 %v2763_v5 }
 0x25f   : > { %v880_v41 = vsel %vm874_vm3, %v2024_v7, %v2058_v14  ;;  %v952_v40 = vsel %vm946_vm5, %v2034_v0, %v2068_v3  ;;  %v881_v45 = vsel %vm874_vm3, %v2058_v14, %v2059_v44  ;;  %v810_v7 = vsel %vm803_vm2, %v2048_v37, %v2049_v20 }
 0x260   : > { %v2777_v15 = vpop.permute.xlu0 %2061  ;;  %v2779_v54 = vpop.permute.xlu1 %1018  ;;  %v1090_v34 = vsel %vm1075_vm4, %v844_v58, %v880_v41  ;;  %v1091_v43 = vsel %vm1075_vm4, %v845_v48, %v881_v45  ;;  %v1070_v37 = vsel %vm1065_vm9, %v2640_v24, %v2733_v30  ;;  %v1082_v14 = vsel %vm1075_vm4, %v2512_v57, %v810_v7 }
 0x261   : > { %v2063_v56 = vunpack.i.l.bf16 %v2777_v15  ;;  %v1819_v60 = vpack.c.bf16 %v1090_v34, %v1081_v25  ;;  %v1032_v63 = vsel %vm1026_vm8, %v2044_v47, %v2779_v54  ;;  %v1829_v41 = vpack.c.bf16 %v1091_v43, %v1082_v14 }
 0x262   : > { %v2064_v42 = vunpack.i.h.bf16 %v2777_v15  ;;  %v953_v57 = vsel %vm946_vm5, %v2068_v3, %v2069_v39 }
 0x263   : > { %1820 = vmatprep.subr.bf16.mxu1 %v1819_v60  ;;  %v916_v50 = vsel %vm910_vm6, %v2029_v1, %v2063_v56 }
 0x264   : > { %v2792_v4 = vpop.permute.xlu0 %2071  ;;  %1822 = vmatpush1.bf16.msra.mxu1 %v1821_v2  ;;  %v838_v16 = vpop.permute.xlu1 %837  ;;  %v1099_v21 = vsel %vm1075_vm4, %v916_v50, %v952_v40  ;;  %v917_v34 = vsel %vm910_vm6, %v2063_v56, %v2064_v42 }
 0x265   : > { %v2073_v28 = vunpack.i.l.bf16 %v2792_v4  ;;  %v846_v36 = vsel %vm531_vm12, %v2054_v53, %v838_v16  ;;  %v2074_v24 = vunpack.i.h.bf16 %v2792_v4  ;;  %vm2227_vm12 = vmmov 0  }
 0x267   : > { %v992_v18 = vsel %vm986_vm7, %v2039_v49, %v2073_v28  ;;  %v2226_v49 = vmov 0.0|0.0   ;;  %v993_v2 = vsel %vm986_vm7, %v2073_v28, %v2074_v24 }
 0x268   : > { %v802_v23 = vpop.permute.xlu0 %801  ;;  %v1108_v26 = vsel %vm1075_vm4, %v992_v18, %v1032_v63  ;;  %v909_v27 = vpop.permute.xlu1 %908  ;;  %v1100_v63 = vsel %vm1075_vm4, %v917_v34, %v953_v57 }
 0x269   : > { %v1823_v11 = vpack.c.bf16 %v1108_v26, %v1099_v21  ;;  %v811_v32 = vsel %vm803_vm2, %v2049_v20, %v802_v23  ;;  %v1084_v58 = vsel %vm1075_vm4, %v2535_v62, %v802_v23  ;;  %v918_v38 = vsel %vm910_vm6, %v2064_v42, %v909_v27 }
 0x26a   : > { %v1083_v51 = vsel %vm1075_vm4, %v2520_v59, %v811_v32 }
 0x26b   : > { %1824 = vmatprep.subr.bf16.mxu1 %v1823_v11 }
 0x26c   : > { %1826 = vmatpush1.bf16.msra.mxu1 %v1825_v8  ;;  %v873_v35 = vpop.permute.xlu0 %872  ;;  %v2077_v12 = vpop.permute.xlu1 %2076 }
 0x26d   : > { %v882_v29 = vsel %vm874_vm3, %v2059_v44, %v873_v35  ;;  %1742 = vmatprep.subr.msk.mxu1 %vm1075_vm4, %v1071_v33  ;;  %v1093_v17 = vsel %vm1075_vm4, %v838_v16, %v873_v35  ;;  %v2079_v30 = vunpack.i.h.bf16 %v2077_v12  ;;  %v2078_v25 = vunpack.i.l.bf16 %v2077_v12 }
 0x26e   : > { %v1092_v13 = vsel %vm1075_vm4, %v846_v36, %v882_v29  ;;  %v1836_v47 = vpack.c.bf16 %v1093_v17, %v1084_v58 }
 0x26f   : > { %v1827_v6 = vpack.c.bf16 %v1092_v13, %v1083_v51  ;;  %v994_v5 = vsel %vm986_vm7, %v2074_v24, %v2078_v25  ;;  %v995_v3 = vsel %vm986_vm7, %v2078_v25, %v2079_v30 }
 0x270   : > { %1743 = vmatpush1.msk.msra.mxu1 %vm1075_vm4, %v1070_v37  ;;  %v945_v59 = vpop.permute.xlu0 %944  ;;  %v1025_v60 = vpop.permute.xlu1 %1024 }
 0x271   : > { %1828 = vmatprep.subr.bf16.mxu0 %v1827_v6  ;;  %1835 = vmatprep.subr.bf16.mxu1 %v2226_v49  ;;  %v954_v61 = vsel %vm946_vm5, %v2069_v39, %v945_v59  ;;  %v1102_v55 = vsel %vm1075_vm4, %v909_v27, %v945_v59 }
 0x272   : > { %1744 = vmatmul.mubr.msk.f32.vlgmr.msra.gmra.mrb[2].mxu1 %vm1113_vm10, %v2674_v9  ;;  %1830 = vmatpush1.bf16.msra.mxu0 %v1829_v41  ;;  %v1101_v50 = vsel %vm1075_vm4, %v918_v38, %v954_v61 }
 0x273   : > { %1837 = vmatpush3.bf16.msra.mxu1 %v1836_v47  ;;  %1796 = vmatprep.mubr.msk.f32.mxu1 %vm2227_vm12, %v2213_v46 }
 0x274   : > { %v2082_v62 = vpop.permute.xlu0 %2081  ;;  %1838 = vmatprep.subr.bf16.mxu1 %v2226_v49  ;;  %v1062_v52 = vpop.permute.xlu1 %1061 }
 0x275   : > { %v2084_v0 = vunpack.i.h.bf16 %v2082_v62  ;;  %v2083_v1 = vunpack.i.l.bf16 %v2082_v62 }
 0x277   : > { %v1035_v15 = vsel %vm1026_vm8, %v2084_v0, %v1025_v60  ;;  %v1033_v56 = vsel %vm1026_vm8, %v2779_v54, %v2083_v1  ;;  %v1034_v16 = vsel %vm1026_vm8, %v2083_v1, %v2084_v0 }
 0x278   : > { %v1060_v4 = vpop.permute.xlu0 %1059  ;;  %v1110_v28 = vsel %vm1075_vm4, %v994_v5, %v1034_v16  ;;  %v1111_v22 = vsel %vm1075_vm4, %v995_v3, %v1035_v15  ;;  %v1109_v19 = vsel %vm1075_vm4, %v993_v2, %v1033_v56 }
 0x279   : > { %v1831_v44 = vpack.c.bf16 %v1110_v28, %v1101_v50  ;;  %v1839_v40 = vpack.c.bf16 %v1111_v22, %v1102_v55  ;;  %v1833_v18 = vpack.c.bf16 %v1109_v19, %v1100_v63  ;;  %v1073_v54 = vsel %vm1065_vm9, %v1060_v4, %v1062_v52 }
 0x27a   : > { %v1072_v23 = vsel %vm1065_vm9, %v2735_v31, %v1060_v4 }
 0x27b   : > { %1832 = vmatprep.subr.bf16.mxu0 %v1831_v44  ;;  %1840 = vmatpush3.bf16.msra.mxu1 %v1839_v40 }
 0x27c   : > { %v1064_v20 = vpop.permute.xlu0 %1063  ;;  %1834 = vmatpush1.bf16.msra.mxu0 %v1833_v18  ;;  %1794 = vmatprep.subr.mxu1 %v2213_v46 }
 0x27d   : > { %v1074_v53 = vsel %vm1065_vm9, %v1062_v52, %v1064_v20  ;;  %1745 = vmatprep.subr.msk.mxu0 %vm1075_vm4, %v1073_v54 }
 0x27f   : > { %1795 = vmatpush3.msk.msra.mxu1 %vm1075_vm4, %v1074_v53 }
 0x280   : > { %1746 = vmatpush1.msk.msra.mxu0 %vm1075_vm4, %v1072_v23  ;;  %1797 = vmatmul.mubr.msk.f32.vlgmr.msra.gmra.mrb[4].mxu1 %vm1113_vm10, %v2674_v9 }
 0x281   : > { %1747 = vmatmul.mubr.msk.f32.vlgmr.msra.gmra.mrb[10].mxu0 %vm1113_vm10, %v2674_v9 }
 0x320   : > { %v1201_v46 = vpop.f32.mrb[0].mxu1 }
 0x321   : > { %1489 = vst [vmem:[%s184_s30] sm:$0xff] %v1201_v46  ;;  %v1203_v21 = vpop.f32.mrb[1].mxu1 }
 0x322   : > { %1490 = vst [vmem:[%s184_s30 + $0x8] sm:$0xff] %v1203_v21 }
 0x330   : > { %v1272_v26 = vpop.f32.mrb[8].mxu0 }
 0x331   : > { %1491 = vst [vmem:[%s184_s30 + $0x10] sm:$0xff] %v1272_v26  ;;  %v1274_v31 = vpop.f32.mrb[9].mxu0 }
 0x332   : > { %1492 = vst [vmem:[%s184_s30 + $0x18] sm:$0xff] %v1274_v31 }
 0x345   : > { %v1343_v27 = vpop.f32.mrb[2].mxu1 }
 0x346   : > { %1493 = vst [vmem:[%s184_s30 + $0x20] sm:$0xff] %v1343_v27  ;;  %v1345_v11 = vpop.f32.mrb[3].mxu1 }
 0x347   : > { %1494 = vst [vmem:[%s184_s30 + $0x28] sm:$0xff] %v1345_v11 }
 0x353   : > { %v1485_v9 = vpop.f32.mrb[4].mxu1 }
 0x354   : > { %v1414_v10 = vpop.f32.mrb[10].mxu0  ;;  %1498 = vst.msk [vmem:[%s184_s30 + $0x40] sm:$0xff] %vm1497_vm11, %v1485_v9  ;;  %v1798_v45 = vpop.f32.mrb[5].mxu1 }
 0x355   : > { %1495 = vst [vmem:[%s184_s30 + $0x30] sm:$0xff] %v1414_v10  ;;  %v1416_v8 = vpop.f32.mrb[11].mxu0 }
 0x356   : > { %1496 = vst [vmem:[%s184_s30 + $0x38] sm:$0xff] %v1416_v8 }
 0x357   : > { %2117 = shalt.err (!%p2114_p10)
}
 0x358   : > { %s2118_s10 = scalar_lea.hbm %s2887_s0, 1152  ;;  %s2122_s2 = scalar_lea.hbm %s2938_s4, 2304 }
 0x359   : > { %p2119_p11 = scmp.ne.s32.totalorder %s2887_s0, %s2118_s10  ;;  %p2123_p1 = scmp.lt.u32.totalorder %s2887_s0, %s2938_s4 }
 0x35a   : > { %p2124_p2 = scmp.lt.u32.totalorder %s2122_s2, %s2118_s10  ;;  %p2126_p4 = scmp.lt.u32.totalorder %s2118_s10, %s2887_s0 }
 0x35b   : > { %p2120_p12 = pnand %p2119_p11, %p2297_p9 }
 0x35c   : > { %p2125_p3 = por %p2124_p2, %p2123_p1 }
 0x35d   : > { %p2121_p0 = pneg %p2120_p12 }
 0x35e   : > { %p2127_p5 = por %p2126_p4, %p2125_p3 }
 0x360   : > { %p2128_p6 = pnand %p2127_p5, %p2121_p0 }
 0x362   : > { %2131 = shalt.err (!%p2128_p6)
}
 0x363   : > { %1843 = dma.vmem_to_hbm [thread:$0]  (%p2297_p9), %s2889_s9, 1152, %s2887_s0, %s1500_s22  }
 0x364 PF: > { %p1849_p7 = scmp.ge.s32.totalorder %s2184_s24, 2  ;;  %s1528_s14 = sand.u32 1, %s2164_s20  }
 0x365   : > { %s1529_s7 = scalar_lea.sflag [#allocation7], %s1528_s14 }
 0x366   : > { %p1846_p8 = pnand %p1849_p7, %p2304_p13 }
 0x368   : > { %2159 = dma.done.wait (!%p1846_p8), %s1529_s7, 1152  }
 0x369   : > { %2161 = vsyncadd (!%p1846_p8), %s1529_s7, 4294966144  ;;  %s23_s24 = sadd.s32 1, %s2184_s24   ;;  %s2955_s11 = sld [smem:[#allocation10_spill]] }
 0x36a   : > { %p20_p10 = scmp.ge.s32.totalorder %s23_s24, 4   ;;  %s2956_s0 = sld [smem:[#allocation14_spill]] }
 0x36b   : > { %s2957_s22 = sld [smem:[#allocation11_spill]]  ;;  %s2958_s23 = sld [smem:[#allocation12_spill]] }
 0x36c   : > { %s2959_s20 = smov %s2168_s21  ;;  %22 = sbr.rel (!%p20_p10) target bundleno = 20 (0x14), region = 105 }
 0x36f   : > { %s2960_s21 = smov %s2955_s11 }
 0x373   :  { %1534 = vsyncpa [#allocation7], 1 }
 0x374   :  { %1536 = vsyncpa [#allocation7 + $0x1], 1 }

</bundles_post_ra>
